<compile_context>
chip_gen: v5e
topology: v5e:2x2
jax: 0.10.0
libtpu: 0.0.40
codegen_flags: <defaults>
</compile_context>

<pallas_src>
import functools

import jax
import jax.numpy as jnp
from jax.experimental import pallas as pl
from jax.experimental.pallas import tpu as pltpu


# ----------------------------------------------------------------------------
# Pallas kernel: out = maybe_relu(A @ B + bias [+ Xs @ Ws] [+ residual])
#   A @ B        : im2col activations x BN-folded conv weights (bf16 -> f32 acc)
#   Xs @ Ws      : fused 1x1 projection shortcut (BN-folded), epilogue only
#   residual     : identity shortcut tensor, epilogue only
# ----------------------------------------------------------------------------
def _gemm_kernel(*refs, relu, has_proj, has_res):
    a_ref, b_ref, c_ref = refs[0], refs[1], refs[2]
    idx = 3
    if has_proj:
        x_ref, w_ref = refs[idx], refs[idx + 1]
        idx += 2
    if has_res:
        r_ref = refs[idx]
        idx += 1
    o_ref, acc_ref = refs[idx], refs[idx + 1]

    @pl.when(pl.program_id(2) == 0)
    def _():
        acc_ref[...] = jnp.zeros_like(acc_ref)

    acc_ref[...] += jnp.dot(a_ref[...], b_ref[...],
                            preferred_element_type=jnp.float32)

    @pl.when(pl.program_id(2) == pl.num_programs(2) - 1)
    def _():
        out = acc_ref[...] + c_ref[...]
        if has_proj:  # fused 1x1 projection shortcut (small extra contraction)
            out = out + jnp.dot(x_ref[...], w_ref[...],
                                preferred_element_type=jnp.float32)
        if has_res:   # identity shortcut
            out = out + r_ref[...].astype(jnp.float32)
        if relu:
            out = jnp.maximum(out, 0.0)
        o_ref[...] = out.astype(o_ref.dtype)


# ----------------------------------------------------------------------------
# Tiling helpers
# ----------------------------------------------------------------------------
def _round_up(x, m):
    return (x + m - 1) // m * m


def _pick_m_tile(m):
    """Row tile: never tiny; >= 2 M blocks when m > 256 (v7x megacore)."""
    if m <= 256:
        return _round_up(m, 16)   # single block, bf16 (16,128) pack aligned
    if m <= 1024:
        return 256
    return 512


def _pick_k_tile(k):
    """Single un-padded K step when small; else a large divisor (no A padding)."""
    if k <= 2048:
        return k
    for t in range(2048, 255, -8):
        if k % t == 0:
            return t
    return k   # no decent divisor: keep K whole rather than starving the MXU


def _pick_n_tile(n):
    """Lane-dense output tile; 256-wide when padded cout fills the 2x256^2 MXU."""
    n_pad = _round_up(n, 128)
    tn = 256 if n_pad % 256 == 0 else 128
    return tn, n_pad


# ----------------------------------------------------------------------------
# Fused GEMM wrapper (BN scale already folded into the columns of b).
# ----------------------------------------------------------------------------
def matmul_bias_act(a, b, bias, *, relu, residual=None, proj=None,
                    out_dtype=jnp.bfloat16):
    M, K = a.shape
    Kb, N = b.shape
    assert K == Kb
    tm = _pick_m_tile(M)
    tk = _pick_k_tile(K)
    tn, Np = _pick_n_tile(N)
    grid = (pl.cdiv(M, tm), Np // tn, K // tk)

    a_p = a.astype(jnp.bfloat16)                      # A is never padded/copied
    b_p = jnp.pad(b.astype(jnp.bfloat16), ((0, 0), (0, Np - N)))
    c_p = jnp.pad(bias.reshape(1, N).astype(jnp.float32), ((0, 0), (0, Np - N)))

    in_specs = [
        pl.BlockSpec((tm, tk), lambda i, j, k: (i, k)),
        pl.BlockSpec((tk, tn), lambda i, j, k: (k, j)),
        pl.BlockSpec((1, tn), lambda i, j, k: (0, j)),
    ]
    inputs = [a_p, b_p, c_p]
    flops = 2 * M * Np * K
    bytes_accessed = a_p.size * 2 + b_p.size * 2 + c_p.size * 4 + M * Np * 2

    has_proj = proj is not None
    if has_proj:
        xs, ws = proj                                  # (M, Ks), (Ks, N)
        Ks = xs.shape[1]
        xs_p = xs.astype(jnp.bfloat16)
        ws_p = jnp.pad(ws.astype(jnp.bfloat16), ((0, 0), (0, Np - N)))
        in_specs += [pl.BlockSpec((tm, Ks), lambda i, j, k: (i, 0)),
                     pl.BlockSpec((Ks, tn), lambda i, j, k: (0, j))]
        inputs += [xs_p, ws_p]
        flops += 2 * M * Np * Ks
        bytes_accessed += xs_p.size * 2 + ws_p.size * 2

    has_res = residual is not None
    if has_res:
        Mg = grid[0] * tm
        r_p = jnp.pad(residual.astype(jnp.bfloat16),
                      ((0, Mg - M), (0, Np - N)))
        in_specs.append(pl.BlockSpec((tm, tn), lambda i, j, k: (i, j)))
        inputs.append(r_p)
        bytes_accessed += r_p.size * 2

    kernel = functools.partial(_gemm_kernel, relu=relu,
                               has_proj=has_proj, has_res=has_res)

    out = pl.pallas_call(
        kernel,
        out_shape=jax.ShapeDtypeStruct((M, Np), out_dtype),
        grid_spec=pltpu.PrefetchScalarGridSpec(
            num_scalar_prefetch=0,
            grid=grid,
            in_specs=in_specs,
            out_specs=pl.BlockSpec((tm, tn), lambda i, j, k: (i, j)),
            scratch_shapes=[pltpu.VMEM((tm, tn), jnp.float32)],
        ),
        compiler_params=pltpu.CompilerParams(
            dimension_semantics=("parallel", "parallel", "arbitrary"),
            vmem_limit_bytes=32 * 1024 * 1024),
        cost_estimate=pl.CostEstimate(flops=flops, transcendentals=0,
                                      bytes_accessed=int(bytes_accessed)),
    )(*inputs)

    if Np != N:
        out = out[:, :N]
    return out


# ----------------------------------------------------------------------------
# Glue: im2col, weight/BN folding, BasicBlock / ResNetLayer structure
# ----------------------------------------------------------------------------
def im2col(x_nhwc, ksize, stride, pad):
    n, h, w, c = x_nhwc.shape
    xp = jnp.pad(x_nhwc, ((0, 0), (pad, pad), (pad, pad), (0, 0)))
    ho = (h + 2 * pad - ksize) // stride + 1
    wo = (w + 2 * pad - ksize) // stride + 1
    cols = []
    for i in range(ksize):
        for j in range(ksize):
            cols.append(xp[:, i:i + (ho - 1) * stride + 1:stride,
                           j:j + (wo - 1) * stride + 1:stride, :])
    patches = jnp.stack(cols, axis=3)                  # (N, Ho, Wo, k*k, C)
    return patches.reshape(n * ho * wo, ksize * ksize * c), ho, wo


def conv_w_mat(w):
    # PyTorch (Cout, Cin, kh, kw) -> (kh*kw*Cin, Cout), matching im2col order.
    cout, cin, kh, kw = w.shape
    return jnp.transpose(w, (2, 3, 1, 0)).reshape(kh * kw * cin, cout)


def bn_fold(bn, eps=1e-5):
    scale = bn["gamma"] / jnp.sqrt(bn["var"] + eps)
    bias = bn["beta"] - bn["mean"] * scale
    return scale, bias


def conv_bn(x_nhwc, w, bn, *, stride, relu, residual=None, proj=None):
    n = x_nhwc.shape[0]
    cout, _, kh, _ = w.shape
    pad = (kh - 1) // 2
    a, ho, wo = im2col(x_nhwc, kh, stride, pad)
    scale, bias = bn_fold(bn)
    wmat = conv_w_mat(w) * scale[None, :]              # fold BN scale into weights
    if proj is not None:
        xs, sc_w, sc_bn = proj                         # fused 1x1 shortcut + BN
        ss, bs = bn_fold(sc_bn)
        ws = sc_w.reshape(cout, sc_w.shape[1]).T * ss[None, :]
        bias = bias + bs
        proj = (xs, ws)
    out = matmul_bias_act(a, wmat, bias, relu=relu, residual=residual, proj=proj)
    return out.reshape(n, ho, wo, cout)


def basic_block(x_nhwc, p, stride):
    n, h, w, cin = x_nhwc.shape

    out1 = conv_bn(x_nhwc, p["conv1_w"], p["bn1"], stride=stride, relu=True)

    if "sc_w" in p:
        # Projection shortcut (1x1 conv stride s + BN) fused into conv2's GEMM.
        xs = x_nhwc[:, ::stride, ::stride, :].reshape(-1, cin)
        return conv_bn(out1, p["conv2_w"], p["bn2"], stride=1, relu=True,
                       proj=(xs, p["sc_w"], p["sc_bn"]))
    # Identity shortcut added in the GEMM epilogue.
    res = x_nhwc.reshape(n * h * w, cin)
    return conv_bn(out1, p["conv2_w"], p["bn2"], stride=1, relu=True,
                   residual=res)


def make_resnet_layer_forward(stride):
    """ResNetLayer.forward: first block with `stride`, remaining blocks stride 1."""
    def forward(params, x_nchw):
        x = jnp.transpose(x_nchw, (0, 2, 3, 1)).astype(jnp.bfloat16)  # NCHW->NHWC
        for bi, bp in enumerate(params):
            x = basic_block(x, bp, stride if bi == 0 else 1)
        return jnp.transpose(x, (0, 3, 1, 2)).astype(jnp.float32)     # ->NCHW f32
    return forward


# ----------------------------------------------------------------------------
# Deterministic parameter init (shapes from ResNetLayer(block, n, cin, cout, s))
# ----------------------------------------------------------------------------
def init_layer_params(key, n_blocks, in_channels, out_channels, stride):
    kit = iter(jax.random.split(key, 32 * n_blocks))

    def nk():
        return next(kit)

    def conv_w(cout, cin, k):
        fan_in = cin * k * k
        return (jax.random.normal(nk(), (cout, cin, k, k), jnp.float32)
                * jnp.sqrt(2.0 / fan_in))

    def bn(c):
        return dict(
            gamma=1.0 + 0.1 * jax.random.normal(nk(), (c,), jnp.float32),
            beta=0.1 * jax.random.normal(nk(), (c,), jnp.float32),
            mean=0.1 * jax.random.normal(nk(), (c,), jnp.float32),
            var=1.0 + 0.1 * jax.random.uniform(nk(), (c,), jnp.float32),
        )

    blocks = []
    for b in range(n_blocks):
        s = stride if b == 0 else 1
        ci = in_channels if b == 0 else out_channels
        bp = dict(conv1_w=conv_w(out_channels, ci, 3), bn1=bn(out_channels),
                  conv2_w=conv_w(out_channels, out_channels, 3),
                  bn2=bn(out_channels))
        if s != 1 or ci != out_channels:
            bp["sc_w"] = conv_w(out_channels, ci, 1)
            bp["sc_bn"] = bn(out_channels)
        blocks.append(bp)
    return blocks


# ----------------------------------------------------------------------------
if __name__ == "__main__":
    key = jax.random.PRNGKey(0)
    k_params, k_x = jax.random.split(key)

    # Small shapes: ResNetLayer(BasicBlock, n_blocks=2, in=16, out=32, stride=2)
    n_blocks, cin, cout, stride = 2, 16, 32, 2
    batch, spatial = 2, 16

    params = init_layer_params(k_params, n_blocks, cin, cout, stride)
    x = jax.random.normal(k_x, (batch, cin, spatial, spatial), jnp.float32)

    forward = jax.jit(make_resnet_layer_forward(stride))
    out = forward(params, x)
    out = jax.block_until_ready(out)

    assert out.shape == (batch, cout, spatial // stride, spatial // stride), out.shape
    assert bool(jnp.all(jnp.isfinite(out)))
    print("KERNEL_OK")
</pallas_src>

<mosaic_0001>
module attributes {stable_mosaic.version = 11 : i64} {
  func.func @_gemm_kernel(%arg0: i32, %arg1: i32, %arg2: i32, %arg3: memref<128x144xbf16, #tpu.memory_space<vmem>>, %arg4: memref<144x128xbf16, #tpu.memory_space<vmem>>, %arg5: memref<1x128xf32, #tpu.memory_space<vmem>>, %arg6: memref<128x128xbf16, #tpu.memory_space<vmem>>, %arg7: memref<128x128xf32, #tpu.memory_space<vmem>>) attributes {dimension_semantics = [#tpu.dimension_semantics<parallel>, #tpu.dimension_semantics<parallel>, #tpu.dimension_semantics<arbitrary>], iteration_bounds = array<i64: 1, 1, 1>, scalar_prefetch = 0 : i64, scratch_operands = 1 : i64, tpu.core_type = #tpu.core_type<tc>, window_params = [{transform_indices = @transform_0, window_bounds = array<i64: 128, 144>}, {transform_indices = @transform_1, window_bounds = array<i64: 144, 128>}, {transform_indices = @transform_2, window_bounds = array<i64: 1, 128>}, {transform_indices = @transform_3, window_bounds = array<i64: 128, 128>}]} {
    %c0_i32 = arith.constant 0 : i32
    %0 = arith.cmpi eq, %arg2, %c0_i32 : i32
    %1 = arith.extui %0 : i1 to i32
    %c0_i32_0 = arith.constant 0 : i32
    %2 = arith.cmpi ne, %1, %c0_i32_0 : i32
    scf.if %2 {
      %cst_10 = arith.constant 0.000000e+00 : f32
      %12 = vector.broadcast %cst_10 : f32 to vector<128x128xf32>
      %c0_11 = arith.constant 0 : index
      %c0_12 = arith.constant 0 : index
      %13 = vector.load %arg7[%c0_11, %c0_12] : memref<128x128xf32, #tpu.memory_space<vmem>>, vector<128x128xf32>
      tpu.vector_store %arg7[%c0_11, %c0_12], %12 {strides = array<i32>} : memref<128x128xf32, #tpu.memory_space<vmem>>, vector<128x128xf32>,
    } else {
    }
    %c0 = arith.constant 0 : index
    %c0_1 = arith.constant 0 : index
    %3 = vector.load %arg7[%c0, %c0_1] : memref<128x128xf32, #tpu.memory_space<vmem>>, vector<128x128xf32>
    %c0_2 = arith.constant 0 : index
    %c0_3 = arith.constant 0 : index
    %4 = vector.load %arg3[%c0_2, %c0_3] : memref<128x144xbf16, #tpu.memory_space<vmem>>, vector<128x144xbf16>
    %c0_4 = arith.constant 0 : index
    %c0_5 = arith.constant 0 : index
    %5 = vector.load %arg4[%c0_4, %c0_5] : memref<144x128xbf16, #tpu.memory_space<vmem>>, vector<144x128xbf16>
    %cst = arith.constant dense<0.000000e+00> : vector<128x128xf32>
    %6 = tpu.matmul %4, %5, %cst {dimension_numbers = #tpu.dot_dimension_numbers<[1], [0], [0], [1], [0, 0, 1, 1], [], []>} : vector<128x144xbf16>, vector<144x128xbf16>, vector<128x128xf32> -> vector<128x128xf32>
    %7 = arith.addf %3, %6 : vector<128x128xf32>
    %c0_6 = arith.constant 0 : index
    %c0_7 = arith.constant 0 : index
    %8 = vector.load %arg7[%c0_6, %c0_7] : memref<128x128xf32, #tpu.memory_space<vmem>>, vector<128x128xf32>
    tpu.vector_store %arg7[%c0_6, %c0_7], %7 {strides = array<i32>} : memref<128x128xf32, #tpu.memory_space<vmem>>, vector<128x128xf32>,
    %c0_i32_8 = arith.constant 0 : i32
    %9 = arith.cmpi eq, %arg2, %c0_i32_8 : i32
    %10 = arith.extui %9 : i1 to i32
    %c0_i32_9 = arith.constant 0 : i32
    %11 = arith.cmpi ne, %10, %c0_i32_9 : i32
    scf.if %11 {
      %c0_10 = arith.constant 0 : index
      %c0_11 = arith.constant 0 : index
      %12 = vector.load %arg7[%c0_10, %c0_11] : memref<128x128xf32, #tpu.memory_space<vmem>>, vector<128x128xf32>
      %c0_12 = arith.constant 0 : index
      %c0_13 = arith.constant 0 : index
      %13 = vector.load %arg5[%c0_12, %c0_13] : memref<1x128xf32, #tpu.memory_space<vmem>>, vector<1x128xf32>
      %14 = vector.broadcast %13 : vector<1x128xf32> to vector<128x128xf32>
      %15 = arith.addf %12, %14 : vector<128x128xf32>
      %cst_14 = arith.constant 0.000000e+00 : f32
      %16 = vector.broadcast %cst_14 : f32 to vector<128x128xf32>
      %17 = arith.maximumf %15, %16 : vector<128x128xf32>
      %18 = arith.truncf %17 : vector<128x128xf32> to vector<128x128xbf16>
      %c0_15 = arith.constant 0 : index
      %c0_16 = arith.constant 0 : index
      %19 = vector.load %arg6[%c0_15, %c0_16] : memref<128x128xbf16, #tpu.memory_space<vmem>>, vector<128x128xbf16>
      tpu.vector_store %arg6[%c0_15, %c0_16], %18 {strides = array<i32>} : memref<128x128xbf16, #tpu.memory_space<vmem>>, vector<128x128xbf16>,
    } else {
    }
    return
  }
  func.func @transform_0(%arg0: i32, %arg1: i32, %arg2: i32) -> (i32, i32) {
    %c0_i32 = arith.constant 0 : i32
    return %arg0, %arg2 : i32, i32
  }
  func.func @transform_1(%arg0: i32, %arg1: i32, %arg2: i32) -> (i32, i32) {
    %c0_i32 = arith.constant 0 : i32
    return %arg2, %arg1 : i32, i32
  }
  func.func @transform_2(%arg0: i32, %arg1: i32, %arg2: i32) -> (i32, i32) {
    %c0_i32 = arith.constant 0 : i32
    %c0_i32_0 = arith.constant 0 : i32
    return %c0_i32, %arg1 : i32, i32
  }
  func.func @transform_3(%arg0: i32, %arg1: i32, %arg2: i32) -> (i32, i32) {
    %c0_i32 = arith.constant 0 : i32
    return %arg0, %arg1 : i32, i32
  }
}

module attributes {stable_mosaic.version = 11 : i64} {
  func.func @_gemm_kernel(%arg0: i32, %arg1: i32, %arg2: i32, %arg3: memref<128x288xbf16, #tpu.memory_space<vmem>>, %arg4: memref<288x128xbf16, #tpu.memory_space<vmem>>, %arg5: memref<1x128xf32, #tpu.memory_space<vmem>>, %arg6: memref<128x16xbf16, #tpu.memory_space<vmem>>, %arg7: memref<16x128xbf16, #tpu.memory_space<vmem>>, %arg8: memref<128x128xbf16, #tpu.memory_space<vmem>>, %arg9: memref<128x128xf32, #tpu.memory_space<vmem>>) attributes {dimension_semantics = [#tpu.dimension_semantics<parallel>, #tpu.dimension_semantics<parallel>, #tpu.dimension_semantics<arbitrary>], iteration_bounds = array<i64: 1, 1, 1>, scalar_prefetch = 0 : i64, scratch_operands = 1 : i64, tpu.core_type = #tpu.core_type<tc>, window_params = [{transform_indices = @transform_0, window_bounds = array<i64: 128, 288>}, {transform_indices = @transform_1, window_bounds = array<i64: 288, 128>}, {transform_indices = @transform_2, window_bounds = array<i64: 1, 128>}, {transform_indices = @transform_3, window_bounds = array<i64: 128, 16>}, {transform_indices = @transform_4, window_bounds = array<i64: 16, 128>}, {transform_indices = @transform_5, window_bounds = array<i64: 128, 128>}]} {
    %c0_i32 = arith.constant 0 : i32
    %0 = arith.cmpi eq, %arg2, %c0_i32 : i32
    %1 = arith.extui %0 : i1 to i32
    %c0_i32_0 = arith.constant 0 : i32
    %2 = arith.cmpi ne, %1, %c0_i32_0 : i32
    scf.if %2 {
      %cst_10 = arith.constant 0.000000e+00 : f32
      %12 = vector.broadcast %cst_10 : f32 to vector<128x128xf32>
      %c0_11 = arith.constant 0 : index
      %c0_12 = arith.constant 0 : index
      %13 = vector.load %arg9[%c0_11, %c0_12] : memref<128x128xf32, #tpu.memory_space<vmem>>, vector<128x128xf32>
      tpu.vector_store %arg9[%c0_11, %c0_12], %12 {strides = array<i32>} : memref<128x128xf32, #tpu.memory_space<vmem>>, vector<128x128xf32>,
    } else {
    }
    %c0 = arith.constant 0 : index
    %c0_1 = arith.constant 0 : index
    %3 = vector.load %arg9[%c0, %c0_1] : memref<128x128xf32, #tpu.memory_space<vmem>>, vector<128x128xf32>
    %c0_2 = arith.constant 0 : index
    %c0_3 = arith.constant 0 : index
    %4 = vector.load %arg3[%c0_2, %c0_3] : memref<128x288xbf16, #tpu.memory_space<vmem>>, vector<128x288xbf16>
    %c0_4 = arith.constant 0 : index
    %c0_5 = arith.constant 0 : index
    %5 = vector.load %arg4[%c0_4, %c0_5] : memref<288x128xbf16, #tpu.memory_space<vmem>>, vector<288x128xbf16>
    %cst = arith.constant dense<0.000000e+00> : vector<128x128xf32>
    %6 = tpu.matmul %4, %5, %cst {dimension_numbers = #tpu.dot_dimension_numbers<[1], [0], [0], [1], [0, 0, 1, 1], [], []>} : vector<128x288xbf16>, vector<288x128xbf16>, vector<128x128xf32> -> vector<128x128xf32>
    %7 = arith.addf %3, %6 : vector<128x128xf32>
    %c0_6 = arith.constant 0 : index
    %c0_7 = arith.constant 0 : index
    %8 = vector.load %arg9[%c0_6, %c0_7] : memref<128x128xf32, #tpu.memory_space<vmem>>, vector<128x128xf32>
    tpu.vector_store %arg9[%c0_6, %c0_7], %7 {strides = array<i32>} : memref<128x128xf32, #tpu.memory_space<vmem>>, vector<128x128xf32>,
    %c0_i32_8 = arith.constant 0 : i32
    %9 = arith.cmpi eq, %arg2, %c0_i32_8 : i32
    %10 = arith.extui %9 : i1 to i32
    %c0_i32_9 = arith.constant 0 : i32
    %11 = arith.cmpi ne, %10, %c0_i32_9 : i32
    scf.if %11 {
      %c0_10 = arith.constant 0 : index
      %c0_11 = arith.constant 0 : index
      %12 = vector.load %arg9[%c0_10, %c0_11] : memref<128x128xf32, #tpu.memory_space<vmem>>, vector<128x128xf32>
      %c0_12 = arith.constant 0 : index
      %c0_13 = arith.constant 0 : index
      %13 = vector.load %arg5[%c0_12, %c0_13] : memref<1x128xf32, #tpu.memory_space<vmem>>, vector<1x128xf32>
      %14 = vector.broadcast %13 : vector<1x128xf32> to vector<128x128xf32>
      %15 = arith.addf %12, %14 : vector<128x128xf32>
      %c0_14 = arith.constant 0 : index
      %c0_15 = arith.constant 0 : index
      %16 = vector.load %arg6[%c0_14, %c0_15] : memref<128x16xbf16, #tpu.memory_space<vmem>>, vector<128x16xbf16>
      %c0_16 = arith.constant 0 : index
      %c0_17 = arith.constant 0 : index
      %17 = vector.load %arg7[%c0_16, %c0_17] : memref<16x128xbf16, #tpu.memory_space<vmem>>, vector<16x128xbf16>
      %cst_18 = arith.constant dense<0.000000e+00> : vector<128x128xf32>
      %18 = tpu.matmul %16, %17, %cst_18 {dimension_numbers = #tpu.dot_dimension_numbers<[1], [0], [0], [1], [0, 0, 1, 1], [], []>} : vector<128x16xbf16>, vector<16x128xbf16>, vector<128x128xf32> -> vector<128x128xf32>
      %19 = arith.addf %15, %18 : vector<128x128xf32>
      %cst_19 = arith.constant 0.000000e+00 : f32
      %20 = vector.broadcast %cst_19 : f32 to vector<128x128xf32>
      %21 = arith.maximumf %19, %20 : vector<128x128xf32>
      %22 = arith.truncf %21 : vector<128x128xf32> to vector<128x128xbf16>
      %c0_20 = arith.constant 0 : index
      %c0_21 = arith.constant 0 : index
      %23 = vector.load %arg8[%c0_20, %c0_21] : memref<128x128xbf16, #tpu.memory_space<vmem>>, vector<128x128xbf16>
      tpu.vector_store %arg8[%c0_20, %c0_21], %22 {strides = array<i32>} : memref<128x128xbf16, #tpu.memory_space<vmem>>, vector<128x128xbf16>,
    } else {
    }
    return
  }
  func.func @transform_0(%arg0: i32, %arg1: i32, %arg2: i32) -> (i32, i32) {
    %c0_i32 = arith.constant 0 : i32
    return %arg0, %arg2 : i32, i32
  }
  func.func @transform_1(%arg0: i32, %arg1: i32, %arg2: i32) -> (i32, i32) {
    %c0_i32 = arith.constant 0 : i32
    return %arg2, %arg1 : i32, i32
  }
  func.func @transform_2(%arg0: i32, %arg1: i32, %arg2: i32) -> (i32, i32) {
    %c0_i32 = arith.constant 0 : i32
    %c0_i32_0 = arith.constant 0 : i32
    return %c0_i32, %arg1 : i32, i32
  }
  func.func @transform_3(%arg0: i32, %arg1: i32, %arg2: i32) -> (i32, i32) {
    %c0_i32 = arith.constant 0 : i32
    %c0_i32_0 = arith.constant 0 : i32
    return %arg0, %c0_i32 : i32, i32
  }
  func.func @transform_4(%arg0: i32, %arg1: i32, %arg2: i32) -> (i32, i32) {
    %c0_i32 = arith.constant 0 : i32
    %c0_i32_0 = arith.constant 0 : i32
    return %c0_i32, %arg1 : i32, i32
  }
  func.func @transform_5(%arg0: i32, %arg1: i32, %arg2: i32) -> (i32, i32) {
    %c0_i32 = arith.constant 0 : i32
    return %arg0, %arg1 : i32, i32
  }
}

module attributes {stable_mosaic.version = 11 : i64} {
  func.func @_gemm_kernel(%arg0: i32, %arg1: i32, %arg2: i32, %arg3: memref<128x288xbf16, #tpu.memory_space<vmem>>, %arg4: memref<288x128xbf16, #tpu.memory_space<vmem>>, %arg5: memref<1x128xf32, #tpu.memory_space<vmem>>, %arg6: memref<128x128xbf16, #tpu.memory_space<vmem>>, %arg7: memref<128x128xf32, #tpu.memory_space<vmem>>) attributes {dimension_semantics = [#tpu.dimension_semantics<parallel>, #tpu.dimension_semantics<parallel>, #tpu.dimension_semantics<arbitrary>], iteration_bounds = array<i64: 1, 1, 1>, scalar_prefetch = 0 : i64, scratch_operands = 1 : i64, tpu.core_type = #tpu.core_type<tc>, window_params = [{transform_indices = @transform_0, window_bounds = array<i64: 128, 288>}, {transform_indices = @transform_1, window_bounds = array<i64: 288, 128>}, {transform_indices = @transform_2, window_bounds = array<i64: 1, 128>}, {transform_indices = @transform_3, window_bounds = array<i64: 128, 128>}]} {
    %c0_i32 = arith.constant 0 : i32
    %0 = arith.cmpi eq, %arg2, %c0_i32 : i32
    %1 = arith.extui %0 : i1 to i32
    %c0_i32_0 = arith.constant 0 : i32
    %2 = arith.cmpi ne, %1, %c0_i32_0 : i32
    scf.if %2 {
      %cst_10 = arith.constant 0.000000e+00 : f32
      %12 = vector.broadcast %cst_10 : f32 to vector<128x128xf32>
      %c0_11 = arith.constant 0 : index
      %c0_12 = arith.constant 0 : index
      %13 = vector.load %arg7[%c0_11, %c0_12] : memref<128x128xf32, #tpu.memory_space<vmem>>, vector<128x128xf32>
      tpu.vector_store %arg7[%c0_11, %c0_12], %12 {strides = array<i32>} : memref<128x128xf32, #tpu.memory_space<vmem>>, vector<128x128xf32>,
    } else {
    }
    %c0 = arith.constant 0 : index
    %c0_1 = arith.constant 0 : index
    %3 = vector.load %arg7[%c0, %c0_1] : memref<128x128xf32, #tpu.memory_space<vmem>>, vector<128x128xf32>
    %c0_2 = arith.constant 0 : index
    %c0_3 = arith.constant 0 : index
    %4 = vector.load %arg3[%c0_2, %c0_3] : memref<128x288xbf16, #tpu.memory_space<vmem>>, vector<128x288xbf16>
    %c0_4 = arith.constant 0 : index
    %c0_5 = arith.constant 0 : index
    %5 = vector.load %arg4[%c0_4, %c0_5] : memref<288x128xbf16, #tpu.memory_space<vmem>>, vector<288x128xbf16>
    %cst = arith.constant dense<0.000000e+00> : vector<128x128xf32>
    %6 = tpu.matmul %4, %5, %cst {dimension_numbers = #tpu.dot_dimension_numbers<[1], [0], [0], [1], [0, 0, 1, 1], [], []>} : vector<128x288xbf16>, vector<288x128xbf16>, vector<128x128xf32> -> vector<128x128xf32>
    %7 = arith.addf %3, %6 : vector<128x128xf32>
    %c0_6 = arith.constant 0 : index
    %c0_7 = arith.constant 0 : index
    %8 = vector.load %arg7[%c0_6, %c0_7] : memref<128x128xf32, #tpu.memory_space<vmem>>, vector<128x128xf32>
    tpu.vector_store %arg7[%c0_6, %c0_7], %7 {strides = array<i32>} : memref<128x128xf32, #tpu.memory_space<vmem>>, vector<128x128xf32>,
    %c0_i32_8 = arith.constant 0 : i32
    %9 = arith.cmpi eq, %arg2, %c0_i32_8 : i32
    %10 = arith.extui %9 : i1 to i32
    %c0_i32_9 = arith.constant 0 : i32
    %11 = arith.cmpi ne, %10, %c0_i32_9 : i32
    scf.if %11 {
      %c0_10 = arith.constant 0 : index
      %c0_11 = arith.constant 0 : index
      %12 = vector.load %arg7[%c0_10, %c0_11] : memref<128x128xf32, #tpu.memory_space<vmem>>, vector<128x128xf32>
      %c0_12 = arith.constant 0 : index
      %c0_13 = arith.constant 0 : index
      %13 = vector.load %arg5[%c0_12, %c0_13] : memref<1x128xf32, #tpu.memory_space<vmem>>, vector<1x128xf32>
      %14 = vector.broadcast %13 : vector<1x128xf32> to vector<128x128xf32>
      %15 = arith.addf %12, %14 : vector<128x128xf32>
      %cst_14 = arith.constant 0.000000e+00 : f32
      %16 = vector.broadcast %cst_14 : f32 to vector<128x128xf32>
      %17 = arith.maximumf %15, %16 : vector<128x128xf32>
      %18 = arith.truncf %17 : vector<128x128xf32> to vector<128x128xbf16>
      %c0_15 = arith.constant 0 : index
      %c0_16 = arith.constant 0 : index
      %19 = vector.load %arg6[%c0_15, %c0_16] : memref<128x128xbf16, #tpu.memory_space<vmem>>, vector<128x128xbf16>
      tpu.vector_store %arg6[%c0_15, %c0_16], %18 {strides = array<i32>} : memref<128x128xbf16, #tpu.memory_space<vmem>>, vector<128x128xbf16>,
    } else {
    }
    return
  }
  func.func @transform_0(%arg0: i32, %arg1: i32, %arg2: i32) -> (i32, i32) {
    %c0_i32 = arith.constant 0 : i32
    return %arg0, %arg2 : i32, i32
  }
  func.func @transform_1(%arg0: i32, %arg1: i32, %arg2: i32) -> (i32, i32) {
    %c0_i32 = arith.constant 0 : i32
    return %arg2, %arg1 : i32, i32
  }
  func.func @transform_2(%arg0: i32, %arg1: i32, %arg2: i32) -> (i32, i32) {
    %c0_i32 = arith.constant 0 : i32
    %c0_i32_0 = arith.constant 0 : i32
    return %c0_i32, %arg1 : i32, i32
  }
  func.func @transform_3(%arg0: i32, %arg1: i32, %arg2: i32) -> (i32, i32) {
    %c0_i32 = arith.constant 0 : i32
    return %arg0, %arg1 : i32, i32
  }
}

module attributes {stable_mosaic.version = 11 : i64} {
  func.func @_gemm_kernel(%arg0: i32, %arg1: i32, %arg2: i32, %arg3: memref<128x288xbf16, #tpu.memory_space<vmem>>, %arg4: memref<288x128xbf16, #tpu.memory_space<vmem>>, %arg5: memref<1x128xf32, #tpu.memory_space<vmem>>, %arg6: memref<128x128xbf16, #tpu.memory_space<vmem>>, %arg7: memref<128x128xbf16, #tpu.memory_space<vmem>>, %arg8: memref<128x128xf32, #tpu.memory_space<vmem>>) attributes {dimension_semantics = [#tpu.dimension_semantics<parallel>, #tpu.dimension_semantics<parallel>, #tpu.dimension_semantics<arbitrary>], iteration_bounds = array<i64: 1, 1, 1>, scalar_prefetch = 0 : i64, scratch_operands = 1 : i64, tpu.core_type = #tpu.core_type<tc>, window_params = [{transform_indices = @transform_0, window_bounds = array<i64: 128, 288>}, {transform_indices = @transform_1, window_bounds = array<i64: 288, 128>}, {transform_indices = @transform_2, window_bounds = array<i64: 1, 128>}, {transform_indices = @transform_3, window_bounds = array<i64: 128, 128>}, {transform_indices = @transform_4, window_bounds = array<i64: 128, 128>}]} {
    %c0_i32 = arith.constant 0 : i32
    %0 = arith.cmpi eq, %arg2, %c0_i32 : i32
    %1 = arith.extui %0 : i1 to i32
    %c0_i32_0 = arith.constant 0 : i32
    %2 = arith.cmpi ne, %1, %c0_i32_0 : i32
    scf.if %2 {
      %cst_10 = arith.constant 0.000000e+00 : f32
      %12 = vector.broadcast %cst_10 : f32 to vector<128x128xf32>
      %c0_11 = arith.constant 0 : index
      %c0_12 = arith.constant 0 : index
      %13 = vector.load %arg8[%c0_11, %c0_12] : memref<128x128xf32, #tpu.memory_space<vmem>>, vector<128x128xf32>
      tpu.vector_store %arg8[%c0_11, %c0_12], %12 {strides = array<i32>} : memref<128x128xf32, #tpu.memory_space<vmem>>, vector<128x128xf32>,
    } else {
    }
    %c0 = arith.constant 0 : index
    %c0_1 = arith.constant 0 : index
    %3 = vector.load %arg8[%c0, %c0_1] : memref<128x128xf32, #tpu.memory_space<vmem>>, vector<128x128xf32>
    %c0_2 = arith.constant 0 : index
    %c0_3 = arith.constant 0 : index
    %4 = vector.load %arg3[%c0_2, %c0_3] : memref<128x288xbf16, #tpu.memory_space<vmem>>, vector<128x288xbf16>
    %c0_4 = arith.constant 0 : index
    %c0_5 = arith.constant 0 : index
    %5 = vector.load %arg4[%c0_4, %c0_5] : memref<288x128xbf16, #tpu.memory_space<vmem>>, vector<288x128xbf16>
    %cst = arith.constant dense<0.000000e+00> : vector<128x128xf32>
    %6 = tpu.matmul %4, %5, %cst {dimension_numbers = #tpu.dot_dimension_numbers<[1], [0], [0], [1], [0, 0, 1, 1], [], []>} : vector<128x288xbf16>, vector<288x128xbf16>, vector<128x128xf32> -> vector<128x128xf32>
    %7 = arith.addf %3, %6 : vector<128x128xf32>
    %c0_6 = arith.constant 0 : index
    %c0_7 = arith.constant 0 : index
    %8 = vector.load %arg8[%c0_6, %c0_7] : memref<128x128xf32, #tpu.memory_space<vmem>>, vector<128x128xf32>
    tpu.vector_store %arg8[%c0_6, %c0_7], %7 {strides = array<i32>} : memref<128x128xf32, #tpu.memory_space<vmem>>, vector<128x128xf32>,
    %c0_i32_8 = arith.constant 0 : i32
    %9 = arith.cmpi eq, %arg2, %c0_i32_8 : i32
    %10 = arith.extui %9 : i1 to i32
    %c0_i32_9 = arith.constant 0 : i32
    %11 = arith.cmpi ne, %10, %c0_i32_9 : i32
    scf.if %11 {
      %c0_10 = arith.constant 0 : index
      %c0_11 = arith.constant 0 : index
      %12 = vector.load %arg8[%c0_10, %c0_11] : memref<128x128xf32, #tpu.memory_space<vmem>>, vector<128x128xf32>
      %c0_12 = arith.constant 0 : index
      %c0_13 = arith.constant 0 : index
      %13 = vector.load %arg5[%c0_12, %c0_13] : memref<1x128xf32, #tpu.memory_space<vmem>>, vector<1x128xf32>
      %14 = vector.broadcast %13 : vector<1x128xf32> to vector<128x128xf32>
      %15 = arith.addf %12, %14 : vector<128x128xf32>
      %c0_14 = arith.constant 0 : index
      %c0_15 = arith.constant 0 : index
      %16 = vector.load %arg6[%c0_14, %c0_15] : memref<128x128xbf16, #tpu.memory_space<vmem>>, vector<128x128xbf16>
      %17 = arith.extf %16 : vector<128x128xbf16> to vector<128x128xf32>
      %18 = arith.addf %15, %17 : vector<128x128xf32>
      %cst_16 = arith.constant 0.000000e+00 : f32
      %19 = vector.broadcast %cst_16 : f32 to vector<128x128xf32>
      %20 = arith.maximumf %18, %19 : vector<128x128xf32>
      %21 = arith.truncf %20 : vector<128x128xf32> to vector<128x128xbf16>
      %c0_17 = arith.constant 0 : index
      %c0_18 = arith.constant 0 : index
      %22 = vector.load %arg7[%c0_17, %c0_18] : memref<128x128xbf16, #tpu.memory_space<vmem>>, vector<128x128xbf16>
      tpu.vector_store %arg7[%c0_17, %c0_18], %21 {strides = array<i32>} : memref<128x128xbf16, #tpu.memory_space<vmem>>, vector<128x128xbf16>,
    } else {
    }
    return
  }
  func.func @transform_0(%arg0: i32, %arg1: i32, %arg2: i32) -> (i32, i32) {
    %c0_i32 = arith.constant 0 : i32
    return %arg0, %arg2 : i32, i32
  }
  func.func @transform_1(%arg0: i32, %arg1: i32, %arg2: i32) -> (i32, i32) {
    %c0_i32 = arith.constant 0 : i32
    return %arg2, %arg1 : i32, i32
  }
  func.func @transform_2(%arg0: i32, %arg1: i32, %arg2: i32) -> (i32, i32) {
    %c0_i32 = arith.constant 0 : i32
    %c0_i32_0 = arith.constant 0 : i32
    return %c0_i32, %arg1 : i32, i32
  }
  func.func @transform_3(%arg0: i32, %arg1: i32, %arg2: i32) -> (i32, i32) {
    %c0_i32 = arith.constant 0 : i32
    return %arg0, %arg1 : i32, i32
  }
  func.func @transform_4(%arg0: i32, %arg1: i32, %arg2: i32) -> (i32, i32) {
    %c0_i32 = arith.constant 0 : i32
    return %arg0, %arg1 : i32, i32
  }
}

</mosaic_0001>

<bundles_post_ra>
// kernel: forward.4
= control target key start
LH: loop header
LB: loop body
LE: loop exit
PB: predicated region body
PF: predicated region fallthrough
CT: control target
= control target key end

     0   :  { %vm211_vm0 = vcmask 130048   ;;  %s843_s1 = inlined_call_operand.vmem [shape: bf16[144,128], index: 1, kind: input, shape index: {}]   ;;  %s844_s0 = inlined_call_operand.vmem [shape: bf16[128,144], index: 0, kind: input, shape index: {}]   ;;  %s845_s2 = inlined_call_operand.vmem [shape: f32[1,128], index: 2, kind: input, shape index: {}]   ;;  %s846_s3 = inlined_call_operand.vmem [shape: bf16[128,128], index: 3, kind: output, shape index: {}]  }
   0x1   :  { %v588_v0 = vld [vmem:[%s843_s1 + $0x38] sm:$0xff]  ;;  %v589_v1 = vld [vmem:[%s843_s1 + $0x40] sm:$0xff]  ;;  %v461_v3 = vld [vmem:[%s844_s0 + $0x8] sm:$0xf0] }
   0x2   :  { %v565_v2 = vld [vmem:[%s844_s0 + $0x4] sm:$0xf]  ;;  %236 = vmatpush.bf16.msra.mxu0 %v588_v0  ;;  %637 = vmatpush.bf16.msra.mxu2 %v588_v0  ;;  %v587_v5 = vld [vmem:[%s843_s1 + $0x30] sm:$0xff]  ;;  %v586_v6 = vld [vmem:[%s843_s1 + $0x28] sm:$0xff] }
   0x3   :  { %v464_v4 = vor.u32 %v565_v2, %v461_v3  ;;  %292 = vmatpush.bf16.msra.mxu1 %v589_v1  ;;  %645 = vmatpush.bf16.msra.mxu3 %v589_v1  ;;  %v575_v7 = vld [vmem:[%s844_s0 + $0x54] sm:$0xf]  ;;  %v501_v8 = vld [vmem:[%s844_s0 + $0x58] sm:$0xf0]  ;;  %v585_v10 = vld [vmem:[%s843_s1 + $0x20] sm:$0xff] }
   0x4   :  { %v504_v9 = vor.u32 %v575_v7, %v501_v8  ;;  %v584_v11 = vld [vmem:[%s843_s1 + $0x18] sm:$0xff]  ;;  %v567_v12 = vld [vmem:[%s844_s0 + $0x14] sm:$0xf]  ;;  %v582_v16 = vld [vmem:[%s843_s1 + $0x8] sm:$0xff] }
   0x5   :  { %v469_v13 = vld [vmem:[%s844_s0 + $0x18] sm:$0xf0]  ;;  %v583_v15 = vld [vmem:[%s843_s1 + $0x10] sm:$0xff]  ;;  %v577_v17 = vld [vmem:[%s844_s0 + $0x64] sm:$0xf] }
   0x6   :  { %557 = vmatmul.msk.bf16.vlgmr.msra.gmra.mxu1 %vm211_vm0, %v464_v4  ;;  %237 = vmatpush.bf16.msra.mxu0 %v587_v5  ;;  %v472_v14 = vor.u32 %v567_v12, %v469_v13  ;;  %v509_v18 = vld [vmem:[%s844_s0 + $0x68] sm:$0xf0]  ;;  %v581_v20 = vld [vmem:[%s843_s1] sm:$0xff]  ;;  %v566_v22 = vld [vmem:[%s844_s0 + $0x4] sm:$0xf0] }
   0x7   :  { %638 = vmatpush.bf16.msra.mxu2 %v587_v5  ;;  %562 = vmatmul.msk.bf16.vlgmr.msra.gmra.mxu3 %vm211_vm0, %v504_v9  ;;  %v512_v19 = vor.u32 %v577_v17, %v509_v18  ;;  %v459_v21 = vld [vmem:[%s844_s0] sm:$0xf]  ;;  %v574_v24 = vld [vmem:[%s844_s0 + $0x44] sm:$0xf0]  ;;  %v569_v27 = vld [vmem:[%s844_s0 + $0x24] sm:$0xf] }
   0x8   :  { %v491_v23 = vld [vmem:[%s844_s0 + $0x40] sm:$0xf]  ;;  %v460_v25 = vor.u32 %v566_v22, %v459_v21  ;;  %v477_v28 = vld [vmem:[%s844_s0 + $0x28] sm:$0xf0]  ;;  %v579_v30 = vld [vmem:[%s844_s0 + $0x74] sm:$0xf] }
   0x9   :  { %v492_v26 = vor.u32 %v574_v24, %v491_v23  ;;  %v480_v29 = vor.u32 %v569_v27, %v477_v28  ;;  %v517_v31 = vld [vmem:[%s844_s0 + $0x78] sm:$0xf0]  ;;  %v467_v33 = vld [vmem:[%s844_s0 + $0x10] sm:$0xf]  ;;  %v568_v34 = vld [vmem:[%s844_s0 + $0x14] sm:$0xf0] }
   0xa   :  { %238 = vmatpush.bf16.msra.mxu0 %v586_v6  ;;  %v520_v32 = vor.u32 %v579_v30, %v517_v31  ;;  %v499_v35 = vld [vmem:[%s844_s0 + $0x50] sm:$0xf]  ;;  %v576_v36 = vld [vmem:[%s844_s0 + $0x54] sm:$0xf0]  ;;  %v468_v37 = vor.u32 %v568_v34, %v467_v33  ;;  %v571_v39 = vld [vmem:[%s844_s0 + $0x34] sm:$0xf] }
   0xb   :  { %639 = vmatpush.bf16.msra.mxu2 %v586_v6  ;;  %v500_v38 = vor.u32 %v576_v36, %v499_v35  ;;  %v485_v40 = vld [vmem:[%s844_s0 + $0x38] sm:$0xf0]  ;;  %v475_v42 = vld [vmem:[%s844_s0 + $0x20] sm:$0xf]  ;;  %v570_v43 = vld [vmem:[%s844_s0 + $0x24] sm:$0xf0] }
   0xc   :  { %v488_v41 = vor.u32 %v571_v39, %v485_v40  ;;  %v507_v44 = vld [vmem:[%s844_s0 + $0x60] sm:$0xf]  ;;  %v578_v45 = vld [vmem:[%s844_s0 + $0x64] sm:$0xf0]  ;;  %v476_v46 = vor.u32 %v570_v43, %v475_v42  ;;  %v573_v48 = vld [vmem:[%s844_s0 + $0x44] sm:$0xf] }
   0xd   :  { %v508_v47 = vor.u32 %v578_v45, %v507_v44  ;;  %v493_v49 = vld [vmem:[%s844_s0 + $0x48] sm:$0xf0]  ;;  %v483_v51 = vld [vmem:[%s844_s0 + $0x30] sm:$0xf]  ;;  %v572_v52 = vld [vmem:[%s844_s0 + $0x34] sm:$0xf0] }
   0xe   :  { %239 = vmatpush.bf16.msra.mxu0 %v585_v10  ;;  %v496_v50 = vor.u32 %v573_v48, %v493_v49  ;;  %v515_v53 = vld [vmem:[%s844_s0 + $0x70] sm:$0xf]  ;;  %v580_v54 = vld [vmem:[%s844_s0 + $0x74] sm:$0xf0]  ;;  %v484_v55 = vor.u32 %v572_v52, %v483_v51  ;;  %v801_v63 = vld [vmem:[%s845_s2] ss:$0 sm:$0xff] }
   0xf   :  { %640 = vmatpush.bf16.msra.mxu2 %v585_v10  ;;  %v516_v56 = vor.u32 %v580_v54, %v515_v53 }
  0x12   :  { %240 = vmatpush.bf16.msra.mxu0 %v584_v11 }
  0x13   :  { %641 = vmatpush.bf16.msra.mxu2 %v584_v11 }
  0x16   :  { %558 = vmatmul.msk.bf16.gmra.mxu1 %vm211_vm0, %v472_v14  ;;  %241 = vmatpush.bf16.msra.mxu0 %v583_v15 }
  0x17   :  { %642 = vmatpush.bf16.msra.mxu2 %v583_v15  ;;  %563 = vmatmul.msk.bf16.gmra.mxu3 %vm211_vm0, %v512_v19 }
  0x1a   :  { %242 = vmatpush.bf16.msra.mxu0 %v582_v16 }
  0x1b   :  { %643 = vmatpush.bf16.msra.mxu2 %v582_v16 }
  0x1e   :  { %243 = vmatpush.bf16.msra.mxu0 %v581_v20 }
  0x1f   :  { %644 = vmatpush.bf16.msra.mxu2 %v581_v20 }
  0x21   :  { %244 = vmatmul.bf16.vlgmr.msra.gmra.mxu0 %v460_v25 }
  0x22   :  { %264 = vmatmul.bf16.vlgmr.msra.gmra.mxu2 %v492_v26 }
  0x26   :  { %559 = vmatmul.msk.bf16.gmra.mxu1 %vm211_vm0, %v480_v29 }
  0x27   :  { %564 = vmatmul.msk.bf16.gmra.mxu3 %vm211_vm0, %v520_v32 }
  0x31   :  { %249 = vmatmul.bf16.gmra.mxu0 %v468_v37 }
  0x32   :  { %269 = vmatmul.bf16.gmra.mxu2 %v500_v38 }
  0x36   :  { %560 = vmatmul.msk.bf16.gmra.mxu1 %vm211_vm0, %v488_v41 }
  0x41   :  { %254 = vmatmul.bf16.gmra.mxu0 %v476_v46 }
  0x42   :  { %274 = vmatmul.bf16.gmra.mxu2 %v508_v47 }
  0x46   :  { %561 = vmatmul.msk.bf16.gmra.mxu1 %vm211_vm0, %v496_v50 }
  0x51   :  { %259 = vmatmul.bf16.gmra.mxu0 %v484_v55 }
  0x52   :  { %279 = vmatmul.bf16.gmra.mxu2 %v516_v56 }
  0x83   :  { %v294_v57 = vpop.f32.mrf.mxu1 }
  0x8a   :  { %v319_v9 = vpop.f32.mrf.mxu3 }
  0x8b   :  { %v296_v58 = vpop.f32.mrf.mxu1 }
  0x92   :  { %v321_v16 = vpop.f32.mrf.mxu3 }
  0x93   :  { %v299_v59 = vpop.f32.mrf.mxu1 }
  0x9a   :  { %v324_v30 = vpop.f32.mrf.mxu3 }
  0x9b   :  { %v301_v60 = vpop.f32.mrf.mxu1 }
  0x9e   :  { %v245_v61 = vpop.f32.mrf.mxu0 }
  0x9f   :  { %v295_v62 = vadd.f32 %v294_v57, %v245_v61 }
  0xa1   :  { %v389_v3 = vadd.f32 %v801_v63, %v295_v62 }
  0xa2   :  { %v326_v42 = vpop.f32.mrf.mxu3 }
  0xa3   :  { %v304_v0 = vpop.f32.mrf.mxu1  ;;  %v405_v6 = vmax.f32 %v389_v3, 0.0 }
  0xa5   :  { %v265_v1 = vpop.f32.mrf.mxu2 }
  0xa6   :  { %v247_v2 = vpop.f32.mrf.mxu0 }
  0xa7   :  { %v297_v4 = vadd.f32 %v296_v58, %v247_v2 }
  0xa9   :  { %v390_v5 = vadd.f32 %v801_v63, %v297_v4 }
  0xaa   :  { %v329_v62 = vpop.f32.mrf.mxu3 }
  0xab   :  { %v406_v7 = vmax.f32 %v390_v5, 0.0  ;;  %v306_v8 = vpop.f32.mrf.mxu1 }
  0xad   :  { %v593_v10 = vpack.c.bf16 %v406_v7, %v405_v6  ;;  %v267_v11 = vpop.f32.mrf.mxu2 }
  0xae   :  { %v250_v12 = vpop.f32.mrf.mxu0 }
  0xaf   :  { %594 = vst [vmem:[%s846_s3] sm:$0xff] %v593_v10   ;;  %v300_v13 = vadd.f32 %v299_v59, %v250_v12 }
  0xb1   :  { %v391_v18 = vadd.f32 %v801_v63, %v300_v13 }
  0xb2   :  { %v331_v10 = vpop.f32.mrf.mxu3 }
  0xb3   :  { %v309_v14 = vpop.f32.mrf.mxu1  ;;  %v407_v22 = vmax.f32 %v391_v18, 0.0 }
  0xb5   :  { %v270_v15 = vpop.f32.mrf.mxu2 }
  0xb6   :  { %v252_v17 = vpop.f32.mrf.mxu0  ;;  %v320_v21 = vadd.f32 %v319_v9, %v270_v15 }
  0xb7   :  { %v302_v19 = vadd.f32 %v301_v60, %v252_v17 }
  0xb8   :  { %v399_v27 = vadd.f32 %v801_v63, %v320_v21 }
  0xb9   :  { %v392_v20 = vadd.f32 %v801_v63, %v302_v19 }
  0xba   :  { %v415_v32 = vmax.f32 %v399_v27, 0.0 }
  0xbb   :  { %v408_v23 = vmax.f32 %v392_v20, 0.0  ;;  %v311_v24 = vpop.f32.mrf.mxu1 }
  0xbd   :  { %v598_v25 = vpack.c.bf16 %v408_v23, %v407_v22  ;;  %v272_v26 = vpop.f32.mrf.mxu2 }
  0xbe   :  { %v322_v28 = vadd.f32 %v321_v16, %v272_v26  ;;  %v255_v29 = vpop.f32.mrf.mxu0 }
  0xbf   :  { %630 = vst [vmem:[%s846_s3 + $0x8] sm:$0xff] %v598_v25   ;;  %v305_v34 = vadd.f32 %v304_v0, %v255_v29 }
  0xc0   :  { %v400_v31 = vadd.f32 %v801_v63, %v322_v28 }
  0xc1   :  { %v393_v39 = vadd.f32 %v801_v63, %v305_v34 }
  0xc2   :  { %v416_v33 = vmax.f32 %v400_v31, 0.0 }
  0xc3   :  { %v314_v35 = vpop.f32.mrf.mxu1  ;;  %v409_v45 = vmax.f32 %v393_v39, 0.0 }
  0xc4   :  { %v618_v36 = vpack.c.bf16 %v416_v33, %v415_v32  ;;  %v315_v41 = vadd.f32 %v314_v35, %v265_v1 }
  0xc5   :  { %v275_v37 = vpop.f32.mrf.mxu2 }
  0xc6   :  { %634 = vst [vmem:[%s846_s3 + $0x28] sm:$0xff] %v618_v36   ;;  %v257_v38 = vpop.f32.mrf.mxu0  ;;  %v325_v44 = vadd.f32 %v324_v30, %v275_v37  ;;  %v397_v48 = vadd.f32 %v801_v63, %v315_v41 }
  0xc7   :  { %v307_v40 = vadd.f32 %v306_v8, %v257_v38 }
  0xc8   :  { %v401_v52 = vadd.f32 %v801_v63, %v325_v44  ;;  %v413_v56 = vmax.f32 %v397_v48, 0.0 }
  0xc9   :  { %v394_v43 = vadd.f32 %v801_v63, %v307_v40 }
  0xca   :  { %v417_v59 = vmax.f32 %v401_v52, 0.0 }
  0xcb   :  { %v410_v46 = vmax.f32 %v394_v43, 0.0  ;;  %v316_v47 = vpop.f32.mrf.mxu1 }
  0xcc   :  { %v317_v49 = vadd.f32 %v316_v47, %v267_v11 }
  0xcd   :  { %v603_v50 = vpack.c.bf16 %v410_v46, %v409_v45  ;;  %v277_v51 = vpop.f32.mrf.mxu2 }
  0xce   :  { %v398_v53 = vadd.f32 %v801_v63, %v317_v49  ;;  %v327_v54 = vadd.f32 %v326_v42, %v277_v51  ;;  %v260_v55 = vpop.f32.mrf.mxu0 }
  0xcf   :  { %631 = vst [vmem:[%s846_s3 + $0x10] sm:$0xff] %v603_v50   ;;  %v310_v0 = vadd.f32 %v309_v14, %v260_v55 }
  0xd0   :  { %v414_v57 = vmax.f32 %v398_v53, 0.0  ;;  %v402_v58 = vadd.f32 %v801_v63, %v327_v54 }
  0xd1   :  { %v395_v4 = vadd.f32 %v801_v63, %v310_v0 }
  0xd2   :  { %v613_v60 = vpack.c.bf16 %v414_v57, %v413_v56  ;;  %v418_v61 = vmax.f32 %v402_v58, 0.0 }
  0xd3   :  { %v411_v8 = vmax.f32 %v395_v4, 0.0 }
  0xd4   :  { %633 = vst [vmem:[%s846_s3 + $0x20] sm:$0xff] %v613_v60   ;;  %v623_v1 = vpack.c.bf16 %v418_v61, %v417_v59 }
  0xd5   :  { %v280_v2 = vpop.f32.mrf.mxu2 }
  0xd6   :  { %635 = vst [vmem:[%s846_s3 + $0x30] sm:$0xff] %v623_v1   ;;  %v262_v3 = vpop.f32.mrf.mxu0  ;;  %v330_v7 = vadd.f32 %v329_v62, %v280_v2 }
  0xd7   :  { %v312_v5 = vadd.f32 %v311_v24, %v262_v3 }
  0xd8   :  { %v403_v13 = vadd.f32 %v801_v63, %v330_v7 }
  0xd9   :  { %v396_v6 = vadd.f32 %v801_v63, %v312_v5 }
  0xda   :  { %v419_v16 = vmax.f32 %v403_v13, 0.0 }
  0xdb   :  { %v412_v9 = vmax.f32 %v396_v6, 0.0 }
  0xdd   :  { %v608_v11 = vpack.c.bf16 %v412_v9, %v411_v8  ;;  %v282_v12 = vpop.f32.mrf.mxu2 }
  0xde   :  { %v332_v14 = vadd.f32 %v331_v10, %v282_v12 }
  0xdf   :  { %632 = vst [vmem:[%s846_s3 + $0x18] sm:$0xff] %v608_v11  }
  0xe0   :  { %v404_v15 = vadd.f32 %v801_v63, %v332_v14 }
  0xe2   :  { %v420_v17 = vmax.f32 %v404_v15, 0.0 }
  0xe4   :  { %v628_v18 = vpack.c.bf16 %v420_v17, %v419_v16 }
  0xe6   :  { %636 = vst [vmem:[%s846_s3 + $0x38] sm:$0xff] %v628_v18  }

// kernel: forward.6
= control target key start
LH: loop header
LB: loop body
LE: loop exit
PB: predicated region body
PF: predicated region fallthrough
CT: control target
= control target key end

     0   :  { %vm347_vm0 = vcmask 261120   ;;  %s1195_s1 = inlined_call_operand.vmem [shape: bf16[288,128], index: 1, kind: input, shape index: {}]   ;;  %s1196_s0 = inlined_call_operand.vmem [shape: bf16[128,288], index: 0, kind: input, shape index: {}]   ;;  %s1197_s2 = inlined_call_operand.vmem [shape: f32[1,128], index: 2, kind: input, shape index: {}]   ;;  %s1198_s3 = inlined_call_operand.vmem [shape: bf16[128,128], index: 3, kind: output, shape index: {}]  }
   0x1   :  { %v849_v0 = vld [vmem:[%s1195_s1 + $0x38] sm:$0xff]  ;;  %v859_v2 = vld [vmem:[%s1195_s1 + $0x88] sm:$0xff]  ;;  %v848_v3 = vld [vmem:[%s1195_s1 + $0x30] sm:$0xff] }
   0x2   :  { %v857_v1 = vld [vmem:[%s1195_s1 + $0x78] sm:$0xff]  ;;  %372 = vmatpush.bf16.msra.mxu0 %v849_v0  ;;  %907 = vmatpush.bf16.msra.mxu3 %v849_v0  ;;  %v856_v4 = vld [vmem:[%s1195_s1 + $0x70] sm:$0xff]  ;;  %v858_v5 = vld [vmem:[%s1195_s1 + $0x80] sm:$0xff] }
   0x3   :  { %421 = vmatpush.bf16.msra.mxu1 %v857_v1  ;;  %476 = vmatpush.bf16.msra.mxu2 %v859_v2  ;;  %v652_v6 = vld [vmem:[%s1196_s0 + $0x8] sm:$0xf]  ;;  %v820_v7 = vld [vmem:[%s1196_s0 + $0x10] sm:$0xf0]  ;;  %v846_v11 = vld [vmem:[%s1195_s1 + $0x20] sm:$0xff] }
   0x4   :  { %v653_v8 = vor.u32 %v820_v7, %v652_v6  ;;  %v847_v9 = vld [vmem:[%s1195_s1 + $0x28] sm:$0xff]  ;;  %v854_v12 = vld [vmem:[%s1195_s1 + $0x60] sm:$0xff]  ;;  %v845_v13 = vld [vmem:[%s1195_s1 + $0x18] sm:$0xff] }
   0x5   :  { %v855_v10 = vld [vmem:[%s1195_s1 + $0x68] sm:$0xff]  ;;  %v853_v14 = vld [vmem:[%s1195_s1 + $0x58] sm:$0xff]  ;;  %v844_v15 = vld [vmem:[%s1195_s1 + $0x10] sm:$0xff] }
   0x6   :  { %373 = vmatpush.bf16.msra.mxu0 %v848_v3  ;;  %908 = vmatpush.bf16.msra.mxu3 %v848_v3  ;;  %v852_v16 = vld [vmem:[%s1195_s1 + $0x50] sm:$0xff]  ;;  %v664_v17 = vld [vmem:[%s1196_s0 + $0x20] sm:$0xf]  ;;  %v823_v18 = vld [vmem:[%s1196_s0 + $0x28] sm:$0xf0] }
   0x7   :  { %422 = vmatpush.bf16.msra.mxu1 %v856_v4  ;;  %477 = vmatpush.bf16.msra.mxu2 %v858_v5  ;;  %v665_v19 = vor.u32 %v823_v18, %v664_v17  ;;  %v843_v20 = vld [vmem:[%s1195_s1 + $0x8] sm:$0xff]  ;;  %v842_v22 = vld [vmem:[%s1195_s1] sm:$0xff]  ;;  %v716_v26 = vld [vmem:[%s1196_s0 + $0x90] sm:$0xf] }
   0x8   :  { %v851_v21 = vld [vmem:[%s1195_s1 + $0x48] sm:$0xff]  ;;  %v850_v23 = vld [vmem:[%s1195_s1 + $0x40] sm:$0xff]  ;;  %v837_v27 = vld [vmem:[%s1196_s0 + $0x98] sm:$0xf0] }
   0x9   :  { %v644_v24 = vld [vmem:[%s1196_s0] sm:$0xf]  ;;  %v819_v25 = vld [vmem:[%s1196_s0 + $0x8] sm:$0xf0]  ;;  %v818_v28 = vld [vmem:[%s1196_s0 + $0x4] sm:$0xf]  ;;  %v717_v31 = vor.u32 %v837_v27, %v716_v26 }
   0xa   :  { %810 = vmatmul.msk.bf16.vlgmr.msra.gmra.mxu2 %vm347_vm0, %v653_v8  ;;  %374 = vmatpush.bf16.msra.mxu0 %v847_v9  ;;  %v646_v29 = vld [vmem:[%s1196_s0 + $0xc] sm:$0xf0]  ;;  %v645_v30 = vor.u32 %v819_v25, %v644_v24  ;;  %v676_v33 = vld [vmem:[%s1196_s0 + $0x38] sm:$0xf]  ;;  %v826_v34 = vld [vmem:[%s1196_s0 + $0x40] sm:$0xf0] }
   0xb   :  { %909 = vmatpush.bf16.msra.mxu3 %v847_v9  ;;  %423 = vmatpush.bf16.msra.mxu1 %v855_v10  ;;  %v649_v32 = vor.u32 %v818_v28, %v646_v29  ;;  %v677_v35 = vor.u32 %v826_v34, %v676_v33  ;;  %v656_v36 = vld [vmem:[%s1196_s0 + $0x18] sm:$0xf]  ;;  %v822_v37 = vld [vmem:[%s1196_s0 + $0x20] sm:$0xf0]  ;;  %v728_v38 = vld [vmem:[%s1196_s0 + $0xa8] sm:$0xf] }
   0xc   :  { %v840_v39 = vld [vmem:[%s1196_s0 + $0xb0] sm:$0xf0]  ;;  %v821_v40 = vld [vmem:[%s1196_s0 + $0x1c] sm:$0xf]  ;;  %v658_v41 = vld [vmem:[%s1196_s0 + $0x24] sm:$0xf0]  ;;  %v657_v42 = vor.u32 %v822_v37, %v656_v36 }
   0xd   :  { %v729_v43 = vor.u32 %v840_v39, %v728_v38  ;;  %v661_v44 = vor.u32 %v821_v40, %v658_v41  ;;  %v688_v45 = vld [vmem:[%s1196_s0 + $0x50] sm:$0xf]  ;;  %v829_v46 = vld [vmem:[%s1196_s0 + $0x58] sm:$0xf0]  ;;  %v824_v50 = vld [vmem:[%s1196_s0 + $0x34] sm:$0xf] }
   0xe   :  { %375 = vmatpush.bf16.msra.mxu0 %v846_v11  ;;  %v689_v47 = vor.u32 %v829_v46, %v688_v45  ;;  %v668_v48 = vld [vmem:[%s1196_s0 + $0x30] sm:$0xf]  ;;  %v825_v49 = vld [vmem:[%s1196_s0 + $0x38] sm:$0xf0]  ;;  %v670_v51 = vld [vmem:[%s1196_s0 + $0x3c] sm:$0xf0] }
   0xf   :  { %910 = vmatpush.bf16.msra.mxu3 %v846_v11  ;;  %424 = vmatpush.bf16.msra.mxu1 %v854_v12  ;;  %v836_v52 = vld [vmem:[%s1196_s0 + $0x94] sm:$0xf]  ;;  %v718_v53 = vld [vmem:[%s1196_s0 + $0x9c] sm:$0xf0]  ;;  %v669_v54 = vor.u32 %v825_v49, %v668_v48  ;;  %v673_v55 = vor.u32 %v824_v50, %v670_v51  ;;  %v700_v57 = vld [vmem:[%s1196_s0 + $0x68] sm:$0xf] }
  0x10   :  { %v721_v56 = vor.u32 %v836_v52, %v718_v53  ;;  %v832_v58 = vld [vmem:[%s1196_s0 + $0x70] sm:$0xf0]  ;;  %v680_v60 = vld [vmem:[%s1196_s0 + $0x48] sm:$0xf]  ;;  %v827_v62 = vld [vmem:[%s1196_s0 + $0x4c] sm:$0xf] }
  0x11   :  { %v701_v59 = vor.u32 %v832_v58, %v700_v57  ;;  %v828_v61 = vld [vmem:[%s1196_s0 + $0x50] sm:$0xf0]  ;;  %v682_v63 = vld [vmem:[%s1196_s0 + $0x54] sm:$0xf0]  ;;  %v839_v0 = vld [vmem:[%s1196_s0 + $0xac] sm:$0xf] }
  0x12   :  { %376 = vmatpush.bf16.msra.mxu0 %v845_v13  ;;  %v681_v2 = vor.u32 %v828_v61, %v680_v60  ;;  %v685_v3 = vor.u32 %v827_v62, %v682_v63  ;;  %v712_v5 = vld [vmem:[%s1196_s0 + $0x80] sm:$0xf]  ;;  %v835_v6 = vld [vmem:[%s1196_s0 + $0x88] sm:$0xf0]  ;;  %v694_v11 = vld [vmem:[%s1196_s0 + $0x6c] sm:$0xf0] }
  0x13   :  { %911 = vmatpush.bf16.msra.mxu3 %v845_v13  ;;  %425 = vmatpush.bf16.msra.mxu1 %v853_v14  ;;  %v713_v7 = vor.u32 %v835_v6, %v712_v5  ;;  %v692_v8 = vld [vmem:[%s1196_s0 + $0x60] sm:$0xf]  ;;  %v831_v9 = vld [vmem:[%s1196_s0 + $0x68] sm:$0xf0]  ;;  %v704_v17 = vld [vmem:[%s1196_s0 + $0x78] sm:$0xf] }
  0x14   :  { %v834_v18 = vld [vmem:[%s1196_s0 + $0x80] sm:$0xf0]  ;;  %v841_v24 = vld [vmem:[%s1196_s0 + $0xb8] sm:$0xf0]  ;;  %v1153_v34 = vld [vmem:[%s1197_s2] ss:$0 sm:$0xff] }
  0x16   :  { %377 = vmatpush.bf16.msra.mxu0 %v844_v15 }
  0x17   :  { %912 = vmatpush.bf16.msra.mxu3 %v844_v15  ;;  %426 = vmatpush.bf16.msra.mxu1 %v852_v16  ;;  %v838_v15 = vld [vmem:[%s1196_s0 + $0xa0] sm:$0xf0] }
  0x1a   :  { %811 = vmatmul.msk.bf16.gmra.mxu2 %vm347_vm0, %v665_v19  ;;  %378 = vmatpush.bf16.msra.mxu0 %v843_v20  ;;  %v833_v19 = vld [vmem:[%s1196_s0 + $0x7c] sm:$0xf] }
  0x1b   :  { %913 = vmatpush.bf16.msra.mxu3 %v843_v20  ;;  %427 = vmatpush.bf16.msra.mxu1 %v851_v21  ;;  %v706_v20 = vld [vmem:[%s1196_s0 + $0x84] sm:$0xf0] }
  0x1e   :  { %379 = vmatpush.bf16.msra.mxu0 %v842_v22 }
  0x1f   :  { %914 = vmatpush.bf16.msra.mxu3 %v842_v22  ;;  %428 = vmatpush.bf16.msra.mxu1 %v850_v23  ;;  %v709_v22 = vor.u32 %v833_v19, %v706_v20 }
  0x21   :  { %380 = vmatmul.bf16.vlgmr.msra.gmra.mxu0 %v645_v30 }
  0x22   :  { %410 = vmatmul.bf16.vlgmr.msra.gmra.mxu3 %v717_v31  ;;  %429 = vmatmul.bf16.vlgmr.msra.gmra.mxu1 %v649_v32 }
  0x23   :  { %915 = vmatpush.bf16.msrb.mxu3 %v857_v1  ;;  %v730_v1 = vld [vmem:[%s1196_s0 + $0xb4] sm:$0xf0] }
  0x27   :  { %916 = vmatpush.bf16.msrb.mxu3 %v856_v4  ;;  %v733_v4 = vor.u32 %v839_v0, %v730_v1 }
  0x2a   :  { %812 = vmatmul.msk.bf16.gmra.mxu2 %vm347_vm0, %v677_v35 }
  0x2b   :  { %917 = vmatpush.bf16.msrb.mxu3 %v855_v10  ;;  %v830_v10 = vld [vmem:[%s1196_s0 + $0x64] sm:$0xf] }
  0x2c   :  { %v697_v13 = vor.u32 %v830_v10, %v694_v11 }
  0x2f   :  { %918 = vmatpush.bf16.msrb.mxu3 %v854_v12  ;;  %v693_v12 = vor.u32 %v831_v9, %v692_v8 }
  0x31   :  { %385 = vmatmul.bf16.gmra.mxu0 %v657_v42 }
  0x32   :  { %415 = vmatmul.bf16.gmra.mxu3 %v729_v43  ;;  %434 = vmatmul.bf16.gmra.mxu1 %v661_v44 }
  0x33   :  { %919 = vmatpush.bf16.msrb.mxu3 %v853_v14  ;;  %v724_v14 = vld [vmem:[%s1196_s0 + $0x98] sm:$0xf] }
  0x37   :  { %920 = vmatpush.bf16.msrb.mxu3 %v852_v16  ;;  %v725_v16 = vor.u32 %v838_v15, %v724_v14 }
  0x3a   :  { %813 = vmatmul.msk.bf16.gmra.mxu2 %vm347_vm0, %v689_v47 }
  0x3b   :  { %921 = vmatpush.bf16.msrb.mxu3 %v851_v21  ;;  %v705_v21 = vor.u32 %v834_v18, %v704_v17 }
  0x3f   :  { %922 = vmatpush.bf16.msrb.mxu3 %v850_v23  ;;  %v736_v23 = vld [vmem:[%s1196_s0 + $0xb0] sm:$0xf] }
  0x40   :  { %v737_v25 = vor.u32 %v841_v24, %v736_v23 }
  0x41   :  { %390 = vmatmul.bf16.gmra.mxu0 %v669_v54 }
  0x42   :  { %439 = vmatmul.bf16.gmra.mxu1 %v673_v55  ;;  %459 = vmatmul.bf16.vlgmr.msrb.gmra.mxu3 %v721_v56 }
  0x4a   :  { %814 = vmatmul.msk.bf16.gmra.mxu2 %vm347_vm0, %v701_v59 }
  0x51   :  { %395 = vmatmul.bf16.gmra.mxu0 %v681_v2 }
  0x52   :  { %444 = vmatmul.bf16.gmra.mxu1 %v685_v3  ;;  %464 = vmatmul.bf16.gmra.mxu3 %v733_v4 }
  0x5a   :  { %815 = vmatmul.msk.bf16.gmra.mxu2 %vm347_vm0, %v713_v7 }
  0x61   :  { %400 = vmatmul.bf16.gmra.mxu0 %v693_v12 }
  0x62   :  { %449 = vmatmul.bf16.gmra.mxu1 %v697_v13 }
  0x6a   :  { %816 = vmatmul.msk.bf16.gmra.mxu2 %vm347_vm0, %v725_v16 }
  0x71   :  { %405 = vmatmul.bf16.gmra.mxu0 %v705_v21 }
  0x72   :  { %454 = vmatmul.bf16.gmra.mxu1 %v709_v22 }
  0x7a   :  { %817 = vmatmul.msk.bf16.gmra.mxu2 %vm347_vm0, %v737_v25 }
  0x8d   :  { %v479_v26 = vpop.f32.mrf.mxu2 }
  0x95   :  { %v481_v27 = vpop.f32.mrf.mxu2 }
  0x9d   :  { %v484_v28 = vpop.f32.mrf.mxu2 }
  0x9e   :  { %v381_v29 = vpop.f32.mrf.mxu0 }
  0x9f   :  { %v430_v30 = vpop.f32.mrf.mxu1 }
  0xa0   :  { %v431_v31 = vadd.f32 %v430_v30, %v381_v29 }
  0xa2   :  { %v480_v33 = vadd.f32 %v479_v26, %v431_v31 }
  0xa4   :  { %v574_v38 = vadd.f32 %v1153_v34, %v480_v33 }
  0xa5   :  { %v486_v32 = vpop.f32.mrf.mxu2  ;;  %v411_v55 = vpop.f32.mrf.mxu3 }
  0xa6   :  { %v383_v35 = vpop.f32.mrf.mxu0  ;;  %v590_v42 = vmax.f32 %v574_v38, 0.0 }
  0xa7   :  { %v432_v36 = vpop.f32.mrf.mxu1 }
  0xa8   :  { %v433_v37 = vadd.f32 %v432_v36, %v383_v35 }
  0xaa   :  { %v482_v39 = vadd.f32 %v481_v27, %v433_v37 }
  0xac   :  { %v575_v40 = vadd.f32 %v1153_v34, %v482_v39 }
  0xad   :  { %v489_v41 = vpop.f32.mrf.mxu2  ;;  %v413_v0 = vpop.f32.mrf.mxu3 }
  0xae   :  { %v591_v43 = vmax.f32 %v575_v40, 0.0  ;;  %v386_v44 = vpop.f32.mrf.mxu0 }
  0xaf   :  { %v435_v45 = vpop.f32.mrf.mxu1 }
  0xb0   :  { %v863_v46 = vpack.c.bf16 %v591_v43, %v590_v42  ;;  %v436_v47 = vadd.f32 %v435_v45, %v386_v44 }
  0xb2   :  { %864 = vst [vmem:[%s1198_s3] sm:$0xff] %v863_v46   ;;  %v485_v49 = vadd.f32 %v484_v28, %v436_v47 }
  0xb4   :  { %v576_v53 = vadd.f32 %v1153_v34, %v485_v49 }
  0xb5   :  { %v491_v48 = vpop.f32.mrf.mxu2  ;;  %v416_v13 = vpop.f32.mrf.mxu3 }
  0xb6   :  { %v388_v50 = vpop.f32.mrf.mxu0  ;;  %v592_v58 = vmax.f32 %v576_v53, 0.0 }
  0xb7   :  { %v437_v51 = vpop.f32.mrf.mxu1 }
  0xb8   :  { %v438_v52 = vadd.f32 %v437_v51, %v388_v50 }
  0xba   :  { %v487_v54 = vadd.f32 %v486_v32, %v438_v52 }
  0xbc   :  { %v577_v56 = vadd.f32 %v1153_v34, %v487_v54 }
  0xbd   :  { %v494_v57 = vpop.f32.mrf.mxu2  ;;  %v418_v22 = vpop.f32.mrf.mxu3 }
  0xbe   :  { %v593_v59 = vmax.f32 %v577_v56, 0.0  ;;  %v391_v60 = vpop.f32.mrf.mxu0 }
  0xbf   :  { %v440_v61 = vpop.f32.mrf.mxu1 }
  0xc0   :  { %v868_v62 = vpack.c.bf16 %v593_v59, %v592_v58  ;;  %v441_v63 = vadd.f32 %v440_v61, %v391_v60 }
  0xc2   :  { %900 = vst [vmem:[%s1198_s3 + $0x8] sm:$0xff] %v868_v62   ;;  %v490_v2 = vadd.f32 %v489_v41, %v441_v63 }
  0xc4   :  { %v578_v6 = vadd.f32 %v1153_v34, %v490_v2 }
  0xc5   :  { %v496_v1 = vpop.f32.mrf.mxu2  ;;  %v460_v33 = vpop.f32.mrf.mxu3 }
  0xc6   :  { %v393_v3 = vpop.f32.mrf.mxu0  ;;  %v594_v10 = vmax.f32 %v578_v6, 0.0  ;;  %v461_v49 = vadd.f32 %v460_v33, %v411_v55 }
  0xc7   :  { %v442_v4 = vpop.f32.mrf.mxu1 }
  0xc8   :  { %v443_v5 = vadd.f32 %v442_v4, %v393_v3 }
  0xca   :  { %v492_v7 = vadd.f32 %v491_v48, %v443_v5 }
  0xcc   :  { %v579_v8 = vadd.f32 %v1153_v34, %v492_v7 }
  0xcd   :  { %v499_v9 = vpop.f32.mrf.mxu2  ;;  %v462_v43 = vpop.f32.mrf.mxu3 }
  0xce   :  { %v595_v11 = vmax.f32 %v579_v8, 0.0  ;;  %v396_v12 = vpop.f32.mrf.mxu0  ;;  %v463_v53 = vadd.f32 %v462_v43, %v413_v0 }
  0xcf   :  { %v445_v14 = vpop.f32.mrf.mxu1 }
  0xd0   :  { %v873_v15 = vpack.c.bf16 %v595_v11, %v594_v10  ;;  %v446_v16 = vadd.f32 %v445_v14, %v396_v12 }
  0xd2   :  { %901 = vst [vmem:[%s1198_s3 + $0x10] sm:$0xff] %v873_v15   ;;  %v495_v18 = vadd.f32 %v494_v57, %v446_v16 }
  0xd4   :  { %v580_v23 = vadd.f32 %v1153_v34, %v495_v18 }
  0xd5   :  { %v501_v17 = vpop.f32.mrf.mxu2  ;;  %v465_v60 = vpop.f32.mrf.mxu3 }
  0xd6   :  { %v398_v19 = vpop.f32.mrf.mxu0  ;;  %v596_v27 = vmax.f32 %v580_v23, 0.0  ;;  %v466_v8 = vadd.f32 %v465_v60, %v416_v13 }
  0xd7   :  { %v447_v20 = vpop.f32.mrf.mxu1 }
  0xd8   :  { %v448_v21 = vadd.f32 %v447_v20, %v398_v19 }
  0xda   :  { %v497_v24 = vadd.f32 %v496_v1, %v448_v21 }
  0xdc   :  { %v581_v25 = vadd.f32 %v1153_v34, %v497_v24 }
  0xdd   :  { %v504_v26 = vpop.f32.mrf.mxu2  ;;  %v467_v10 = vpop.f32.mrf.mxu3 }
  0xde   :  { %v597_v28 = vmax.f32 %v581_v25, 0.0  ;;  %v401_v29 = vpop.f32.mrf.mxu0  ;;  %v468_v12 = vadd.f32 %v467_v10, %v418_v22 }
  0xdf   :  { %v450_v30 = vpop.f32.mrf.mxu1 }
  0xe0   :  { %v878_v31 = vpack.c.bf16 %v597_v28, %v596_v27  ;;  %v451_v32 = vadd.f32 %v450_v30, %v401_v29 }
  0xe2   :  { %902 = vst [vmem:[%s1198_s3 + $0x18] sm:$0xff] %v878_v31   ;;  %v500_v36 = vadd.f32 %v499_v9, %v451_v32 }
  0xe4   :  { %v582_v40 = vadd.f32 %v1153_v34, %v500_v36 }
  0xe5   :  { %v506_v35 = vpop.f32.mrf.mxu2 }
  0xe6   :  { %v403_v37 = vpop.f32.mrf.mxu0  ;;  %v598_v45 = vmax.f32 %v582_v40, 0.0 }
  0xe7   :  { %v452_v38 = vpop.f32.mrf.mxu1 }
  0xe8   :  { %v453_v39 = vadd.f32 %v452_v38, %v403_v37 }
  0xea   :  { %v502_v41 = vadd.f32 %v501_v17, %v453_v39 }
  0xec   :  { %v583_v42 = vadd.f32 %v1153_v34, %v502_v41 }
  0xed   :  { %v509_v44 = vpop.f32.mrf.mxu2 }
  0xee   :  { %v599_v46 = vmax.f32 %v583_v42, 0.0  ;;  %v406_v47 = vpop.f32.mrf.mxu0  ;;  %v510_v51 = vadd.f32 %v509_v44, %v461_v49 }
  0xef   :  { %v455_v48 = vpop.f32.mrf.mxu1 }
  0xf0   :  { %v883_v50 = vpack.c.bf16 %v599_v46, %v598_v45  ;;  %v456_v52 = vadd.f32 %v455_v48, %v406_v47  ;;  %v586_v56 = vadd.f32 %v1153_v34, %v510_v51 }
  0xf2   :  { %903 = vst [vmem:[%s1198_s3 + $0x20] sm:$0xff] %v883_v50   ;;  %v505_v57 = vadd.f32 %v504_v26, %v456_v52  ;;  %v602_v55 = vmax.f32 %v586_v56, 0.0 }
  0xf4   :  { %v584_v1 = vadd.f32 %v1153_v34, %v505_v57 }
  0xf5   :  { %v511_v54 = vpop.f32.mrf.mxu2 }
  0xf6   :  { %v512_v58 = vadd.f32 %v511_v54, %v463_v53  ;;  %v408_v59 = vpop.f32.mrf.mxu0  ;;  %v600_v6 = vmax.f32 %v584_v1, 0.0 }
  0xf7   :  { %v457_v61 = vpop.f32.mrf.mxu1 }
  0xf8   :  { %v587_v62 = vadd.f32 %v1153_v34, %v512_v58  ;;  %v458_v63 = vadd.f32 %v457_v61, %v408_v59 }
  0xfa   :  { %v603_v2 = vmax.f32 %v587_v62, 0.0  ;;  %v507_v3 = vadd.f32 %v506_v35, %v458_v63 }
  0xfc   :  { %v893_v4 = vpack.c.bf16 %v603_v2, %v602_v55  ;;  %v585_v5 = vadd.f32 %v1153_v34, %v507_v3 }
  0xfd   :  { %v514_v0 = vpop.f32.mrf.mxu2 }
  0xfe   :  { %905 = vst [vmem:[%s1198_s3 + $0x30] sm:$0xff] %v893_v4   ;;  %v601_v7 = vmax.f32 %v585_v5, 0.0  ;;  %v515_v11 = vadd.f32 %v514_v0, %v466_v8 }
 0x100   :  { %v888_v9 = vpack.c.bf16 %v601_v7, %v600_v6  ;;  %v588_v15 = vadd.f32 %v1153_v34, %v515_v11 }
 0x102   :  { %904 = vst [vmem:[%s1198_s3 + $0x28] sm:$0xff] %v888_v9   ;;  %v604_v18 = vmax.f32 %v588_v15, 0.0 }
 0x105   :  { %v516_v14 = vpop.f32.mrf.mxu2 }
 0x106   :  { %v517_v16 = vadd.f32 %v516_v14, %v468_v12 }
 0x108   :  { %v589_v17 = vadd.f32 %v1153_v34, %v517_v16 }
 0x10a   :  { %v605_v19 = vmax.f32 %v589_v17, 0.0 }
 0x10c   :  { %v898_v20 = vpack.c.bf16 %v605_v19, %v604_v18 }
 0x10e   :  { %906 = vst [vmem:[%s1198_s3 + $0x38] sm:$0xff] %v898_v20  }

// kernel: forward.5
= control target key start
LH: loop header
LB: loop body
LE: loop exit
PB: predicated region body
PF: predicated region fallthrough
CT: control target
= control target key end

     0   :  { %vm353_vm0 = vcmask 261120   ;;  %vm660_vm1 = vcmask 130048   ;;  %s1437_s1 = inlined_call_operand.vmem [shape: bf16[288,128], index: 1, kind: input, shape index: {}]   ;;  %s1438_s0 = inlined_call_operand.vmem [shape: bf16[128,288], index: 0, kind: input, shape index: {}]   ;;  %s1439_s4 = inlined_call_operand.vmem [shape: bf16[16,128], index: 4, kind: input, shape index: {}]   ;;  %s1440_s3 = inlined_call_operand.vmem [shape: bf16[128,16], index: 3, kind: input, shape index: {}]   ;;  %s1441_s2 = inlined_call_operand.vmem [shape: f32[1,128], index: 2, kind: input, shape index: {}]   ;;  %s1442_s5 = inlined_call_operand.vmem [shape: bf16[128,128], index: 5, kind: output, shape index: {}]  }
   0x1   :  { %v1053_v0 = vld [vmem:[%s1437_s1 + $0x38] sm:$0xff]  ;;  %v1052_v2 = vld [vmem:[%s1437_s1 + $0x30] sm:$0xff]  ;;  %v1063_v4 = vld [vmem:[%s1437_s1 + $0x88] sm:$0xff] }
   0x2   :  { %v1061_v1 = vld [vmem:[%s1437_s1 + $0x78] sm:$0xff]  ;;  %378 = vmatpush.bf16.msra.mxu0 %v1053_v0  ;;  %v1060_v3 = vld [vmem:[%s1437_s1 + $0x70] sm:$0xff]  ;;  %482 = vmatpush.bf16.msra.mxu2 %v1063_v4  ;;  %v1062_v5 = vld [vmem:[%s1437_s1 + $0x80] sm:$0xff] }
   0x3   :  { %427 = vmatpush.bf16.msra.mxu1 %v1061_v1  ;;  %v812_v6 = vld [vmem:[%s1438_s0 + $0x8] sm:$0xf]  ;;  %v1024_v7 = vld [vmem:[%s1438_s0 + $0x10] sm:$0xf0]  ;;  %v1072_v8 = vld [vmem:[%s1439_s4] sm:$0xff] }
   0x4   :  { %v1051_v9 = vld [vmem:[%s1437_s1 + $0x28] sm:$0xff]  ;;  %v813_v11 = vor.u32 %v1024_v7, %v812_v6  ;;  %692 = vmatpush.bf16.msra.mxu3 %v1072_v8  ;;  %v1064_v12 = vld [vmem:[%s1440_s3] sm:$0xff]  ;;  %v1049_v15 = vld [vmem:[%s1437_s1 + $0x18] sm:$0xff] }
   0x5   :  { %v1059_v10 = vld [vmem:[%s1437_s1 + $0x68] sm:$0xff]  ;;  %v1050_v13 = vld [vmem:[%s1437_s1 + $0x20] sm:$0xff]  ;;  %v1057_v16 = vld [vmem:[%s1437_s1 + $0x58] sm:$0xff] }
   0x6   :  { %379 = vmatpush.bf16.msra.mxu0 %v1052_v2  ;;  %483 = vmatpush.bf16.msra.mxu2 %v1062_v5  ;;  %v1058_v14 = vld [vmem:[%s1437_s1 + $0x60] sm:$0xff]  ;;  %v1048_v17 = vld [vmem:[%s1437_s1 + $0x10] sm:$0xff]  ;;  %v1027_v20 = vld [vmem:[%s1438_s0 + $0x28] sm:$0xf0] }
   0x7   :  { %428 = vmatpush.bf16.msra.mxu1 %v1060_v3  ;;  %1014 = vmatmul.msk.bf16.vlgmr.msra.gmra.mxu3 %vm660_vm1, %v1064_v12  ;;  %v1056_v18 = vld [vmem:[%s1437_s1 + $0x50] sm:$0xff]  ;;  %v824_v19 = vld [vmem:[%s1438_s0 + $0x20] sm:$0xf]  ;;  %v1047_v21 = vld [vmem:[%s1437_s1 + $0x8] sm:$0xff] }
   0x8   :  { %v1055_v22 = vld [vmem:[%s1437_s1 + $0x48] sm:$0xff]  ;;  %v825_v23 = vor.u32 %v1027_v20, %v824_v19  ;;  %v1046_v25 = vld [vmem:[%s1437_s1] sm:$0xff]  ;;  %v806_v30 = vld [vmem:[%s1438_s0 + $0xc] sm:$0xf0] }
   0x9   :  { %970 = vmatmul.msk.bf16.vlgmr.msra.gmra.mxu2 %vm353_vm0, %v813_v11  ;;  %v1065_v24 = vld [vmem:[%s1440_s3 + $0x8] sm:$0xff]  ;;  %v1054_v26 = vld [vmem:[%s1437_s1 + $0x40] sm:$0xff]  ;;  %v836_v33 = vld [vmem:[%s1438_s0 + $0x38] sm:$0xf] }
   0xa   :  { %380 = vmatpush.bf16.msra.mxu0 %v1051_v9  ;;  %v804_v27 = vld [vmem:[%s1438_s0] sm:$0xf]  ;;  %v1023_v28 = vld [vmem:[%s1438_s0 + $0x8] sm:$0xf0]  ;;  %v1022_v29 = vld [vmem:[%s1438_s0 + $0x4] sm:$0xf] }
   0xb   :  { %429 = vmatpush.bf16.msra.mxu1 %v1059_v10  ;;  %v805_v31 = vor.u32 %v1023_v28, %v804_v27  ;;  %v809_v32 = vor.u32 %v1022_v29, %v806_v30  ;;  %v1030_v34 = vld [vmem:[%s1438_s0 + $0x40] sm:$0xf0]  ;;  %v1066_v36 = vld [vmem:[%s1440_s3 + $0x10] sm:$0xff]  ;;  %v816_v37 = vld [vmem:[%s1438_s0 + $0x18] sm:$0xf] }
   0xc   :  { %v837_v35 = vor.u32 %v1030_v34, %v836_v33  ;;  %v1026_v38 = vld [vmem:[%s1438_s0 + $0x20] sm:$0xf0]  ;;  %v1025_v39 = vld [vmem:[%s1438_s0 + $0x1c] sm:$0xf]  ;;  %v818_v40 = vld [vmem:[%s1438_s0 + $0x24] sm:$0xf0] }
   0xd   :  { %v817_v41 = vor.u32 %v1026_v38, %v816_v37  ;;  %v821_v42 = vor.u32 %v1025_v39, %v818_v40  ;;  %v848_v43 = vld [vmem:[%s1438_s0 + $0x50] sm:$0xf]  ;;  %v1033_v44 = vld [vmem:[%s1438_s0 + $0x58] sm:$0xf0]  ;;  %v1028_v49 = vld [vmem:[%s1438_s0 + $0x34] sm:$0xf] }
   0xe   :  { %381 = vmatpush.bf16.msra.mxu0 %v1050_v13  ;;  %v849_v45 = vor.u32 %v1033_v44, %v848_v43  ;;  %v1067_v46 = vld [vmem:[%s1440_s3 + $0x18] sm:$0xff]  ;;  %v828_v47 = vld [vmem:[%s1438_s0 + $0x30] sm:$0xf]  ;;  %v830_v50 = vld [vmem:[%s1438_s0 + $0x3c] sm:$0xf0] }
   0xf   :  { %430 = vmatpush.bf16.msra.mxu1 %v1058_v14  ;;  %v1029_v48 = vld [vmem:[%s1438_s0 + $0x38] sm:$0xf0]  ;;  %v833_v52 = vor.u32 %v1028_v49, %v830_v50  ;;  %v860_v53 = vld [vmem:[%s1438_s0 + $0x68] sm:$0xf]  ;;  %v1036_v54 = vld [vmem:[%s1438_s0 + $0x70] sm:$0xf0] }
  0x10   :  { %v829_v51 = vor.u32 %v1029_v48, %v828_v47  ;;  %v861_v55 = vor.u32 %v1036_v54, %v860_v53  ;;  %v1068_v56 = vld [vmem:[%s1440_s3 + $0x20] sm:$0xff]  ;;  %v840_v57 = vld [vmem:[%s1438_s0 + $0x48] sm:$0xf]  ;;  %v1032_v58 = vld [vmem:[%s1438_s0 + $0x50] sm:$0xf0] }
  0x11   :  { %v1031_v59 = vld [vmem:[%s1438_s0 + $0x4c] sm:$0xf]  ;;  %v842_v60 = vld [vmem:[%s1438_s0 + $0x54] sm:$0xf0]  ;;  %v841_v61 = vor.u32 %v1032_v58, %v840_v57  ;;  %v872_v63 = vld [vmem:[%s1438_s0 + $0x80] sm:$0xf] }
  0x12   :  { %382 = vmatpush.bf16.msra.mxu0 %v1049_v15  ;;  %v845_v62 = vor.u32 %v1031_v59, %v842_v60  ;;  %v1039_v0 = vld [vmem:[%s1438_s0 + $0x88] sm:$0xf0]  ;;  %v852_v3 = vld [vmem:[%s1438_s0 + $0x60] sm:$0xf]  ;;  %v1034_v5 = vld [vmem:[%s1438_s0 + $0x64] sm:$0xf] }
  0x13   :  { %431 = vmatpush.bf16.msra.mxu1 %v1057_v16  ;;  %v873_v1 = vor.u32 %v1039_v0, %v872_v63  ;;  %v1069_v2 = vld [vmem:[%s1440_s3 + $0x28] sm:$0xff]  ;;  %v854_v6 = vld [vmem:[%s1438_s0 + $0x6c] sm:$0xf0]  ;;  %v884_v9 = vld [vmem:[%s1438_s0 + $0x98] sm:$0xf] }
  0x14   :  { %v1035_v4 = vld [vmem:[%s1438_s0 + $0x68] sm:$0xf0]  ;;  %v857_v8 = vor.u32 %v1034_v5, %v854_v6  ;;  %v1042_v10 = vld [vmem:[%s1438_s0 + $0xa0] sm:$0xf0]  ;;  %v1070_v12 = vld [vmem:[%s1440_s3 + $0x30] sm:$0xff] }
  0x15   :  { %v853_v7 = vor.u32 %v1035_v4, %v852_v3  ;;  %v885_v11 = vor.u32 %v1042_v10, %v884_v9  ;;  %v864_v13 = vld [vmem:[%s1438_s0 + $0x78] sm:$0xf]  ;;  %v1038_v14 = vld [vmem:[%s1438_s0 + $0x80] sm:$0xf0]  ;;  %v1037_v15 = vld [vmem:[%s1438_s0 + $0x7c] sm:$0xf] }
  0x16   :  { %383 = vmatpush.bf16.msra.mxu0 %v1048_v17  ;;  %v866_v16 = vld [vmem:[%s1438_s0 + $0x84] sm:$0xf0]  ;;  %v865_v17 = vor.u32 %v1038_v14, %v864_v13  ;;  %v896_v19 = vld [vmem:[%s1438_s0 + $0xb0] sm:$0xf]  ;;  %v1045_v20 = vld [vmem:[%s1438_s0 + $0xb8] sm:$0xf0] }
  0x17   :  { %432 = vmatpush.bf16.msra.mxu1 %v1056_v18  ;;  %1015 = vmatmul.msk.bf16.gmra.mxu3 %vm660_vm1, %v1065_v24  ;;  %v869_v18 = vor.u32 %v1037_v15, %v866_v16  ;;  %v1041_v24 = vld [vmem:[%s1438_s0 + $0x98] sm:$0xf0]  ;;  %v888_v29 = vld [vmem:[%s1438_s0 + $0xa8] sm:$0xf]  ;;  %v1044_v30 = vld [vmem:[%s1438_s0 + $0xb0] sm:$0xf0] }
  0x18   :  { %v889_v33 = vor.u32 %v1044_v30, %v888_v29 }
  0x19   :  { %971 = vmatmul.msk.bf16.gmra.mxu2 %vm353_vm0, %v825_v23  ;;  %v876_v23 = vld [vmem:[%s1438_s0 + $0x90] sm:$0xf] }
  0x1a   :  { %384 = vmatpush.bf16.msra.mxu0 %v1047_v21  ;;  %v897_v21 = vor.u32 %v1045_v20, %v896_v19  ;;  %v877_v27 = vor.u32 %v1041_v24, %v876_v23 }
  0x1b   :  { %433 = vmatpush.bf16.msra.mxu1 %v1055_v22  ;;  %v1071_v22 = vld [vmem:[%s1440_s3 + $0x38] sm:$0xff] }
  0x1e   :  { %385 = vmatpush.bf16.msra.mxu0 %v1046_v25  ;;  %v1040_v25 = vld [vmem:[%s1438_s0 + $0x94] sm:$0xf] }
  0x1f   :  { %434 = vmatpush.bf16.msra.mxu1 %v1054_v26  ;;  %v878_v26 = vld [vmem:[%s1438_s0 + $0x9c] sm:$0xf0] }
  0x20   :  { %v881_v28 = vor.u32 %v1040_v25, %v878_v26 }
  0x21   :  { %386 = vmatmul.bf16.vlgmr.msra.gmra.mxu0 %v805_v31  ;;  %v1043_v31 = vld [vmem:[%s1438_s0 + $0xac] sm:$0xf] }
  0x22   :  { %435 = vmatmul.bf16.vlgmr.msra.gmra.mxu1 %v809_v32  ;;  %v890_v32 = vld [vmem:[%s1438_s0 + $0xb4] sm:$0xf0] }
  0x23   :  { %v893_v34 = vor.u32 %v1043_v31, %v890_v32 }
  0x27   :  { %1016 = vmatmul.msk.bf16.gmra.mxu3 %vm660_vm1, %v1066_v36 }
  0x29   :  { %972 = vmatmul.msk.bf16.gmra.mxu2 %vm353_vm0, %v837_v35 }
  0x31   :  { %391 = vmatmul.bf16.gmra.mxu0 %v817_v41 }
  0x32   :  { %440 = vmatmul.bf16.gmra.mxu1 %v821_v42 }
  0x37   :  { %1017 = vmatmul.msk.bf16.gmra.mxu3 %vm660_vm1, %v1067_v46 }
  0x39   :  { %973 = vmatmul.msk.bf16.gmra.mxu2 %vm353_vm0, %v849_v45  ;;  %v1395_v45 = vld [vmem:[%s1441_s2] ss:$0 sm:$0xff] }
  0x41   :  { %396 = vmatmul.bf16.gmra.mxu0 %v829_v51 }
  0x42   :  { %445 = vmatmul.bf16.gmra.mxu1 %v833_v52 }
  0x47   :  { %1018 = vmatmul.msk.bf16.gmra.mxu3 %vm660_vm1, %v1068_v56 }
  0x49   :  { %974 = vmatmul.msk.bf16.gmra.mxu2 %vm353_vm0, %v861_v55 }
  0x51   :  { %401 = vmatmul.bf16.gmra.mxu0 %v841_v61 }
  0x52   :  { %450 = vmatmul.bf16.gmra.mxu1 %v845_v62 }
  0x57   :  { %1019 = vmatmul.msk.bf16.gmra.mxu3 %vm660_vm1, %v1069_v2 }
  0x59   :  { %975 = vmatmul.msk.bf16.gmra.mxu2 %vm353_vm0, %v873_v1 }
  0x61   :  { %406 = vmatmul.bf16.gmra.mxu0 %v853_v7 }
  0x62   :  { %455 = vmatmul.bf16.gmra.mxu1 %v857_v8 }
  0x67   :  { %1020 = vmatmul.msk.bf16.gmra.mxu3 %vm660_vm1, %v1070_v12 }
  0x69   :  { %976 = vmatmul.msk.bf16.gmra.mxu2 %vm353_vm0, %v885_v11 }
  0x71   :  { %411 = vmatmul.bf16.gmra.mxu0 %v865_v17 }
  0x72   :  { %460 = vmatmul.bf16.gmra.mxu1 %v869_v18 }
  0x77   :  { %1021 = vmatmul.msk.bf16.gmra.mxu3 %vm660_vm1, %v1071_v22 }
  0x79   :  { %977 = vmatmul.msk.bf16.gmra.mxu2 %vm353_vm0, %v897_v21 }
  0x81   :  { %416 = vmatmul.bf16.gmra.mxu0 %v877_v27 }
  0x82   :  { %465 = vmatmul.bf16.gmra.mxu1 %v881_v28 }
  0x8a   :  { %v694_v36 = vpop.f32.mrf.mxu3 }
  0x8c   :  { %v485_v35 = vpop.f32.mrf.mxu2 }
  0x91   :  { %421 = vmatmul.bf16.gmra.mxu0 %v889_v33 }
  0x92   :  { %470 = vmatmul.bf16.gmra.mxu1 %v893_v34  ;;  %v696_v38 = vpop.f32.mrf.mxu3 }
  0x94   :  { %v487_v37 = vpop.f32.mrf.mxu2 }
  0x9a   :  { %v699_v43 = vpop.f32.mrf.mxu3 }
  0x9c   :  { %v490_v42 = vpop.f32.mrf.mxu2 }
  0x9e   :  { %v387_v39 = vpop.f32.mrf.mxu0 }
  0x9f   :  { %v436_v40 = vpop.f32.mrf.mxu1 }
  0xa0   :  { %v437_v41 = vadd.f32 %v436_v40, %v387_v39 }
  0xa2   :  { %v486_v44 = vadd.f32 %v485_v35, %v437_v41  ;;  %v701_v51 = vpop.f32.mrf.mxu3 }
  0xa4   :  { %v580_v48 = vadd.f32 %v1395_v45, %v486_v44  ;;  %v492_v50 = vpop.f32.mrf.mxu2 }
  0xa6   :  { %v389_v46 = vpop.f32.mrf.mxu0  ;;  %v734_v53 = vadd.f32 %v694_v36, %v580_v48 }
  0xa7   :  { %v438_v47 = vpop.f32.mrf.mxu1 }
  0xa8   :  { %v439_v49 = vadd.f32 %v438_v47, %v389_v46  ;;  %v750_v58 = vmax.f32 %v734_v53, 0.0 }
  0xaa   :  { %v488_v52 = vadd.f32 %v487_v37, %v439_v49  ;;  %v704_v62 = vpop.f32.mrf.mxu3 }
  0xac   :  { %v581_v54 = vadd.f32 %v1395_v45, %v488_v52  ;;  %v495_v61 = vpop.f32.mrf.mxu2 }
  0xae   :  { %v735_v55 = vadd.f32 %v696_v38, %v581_v54  ;;  %v392_v56 = vpop.f32.mrf.mxu0 }
  0xaf   :  { %v441_v57 = vpop.f32.mrf.mxu1 }
  0xb0   :  { %v751_v59 = vmax.f32 %v735_v55, 0.0  ;;  %v442_v60 = vadd.f32 %v441_v57, %v392_v56 }
  0xb2   :  { %v1076_v63 = vpack.c.bf16 %v751_v59, %v750_v58  ;;  %v491_v0 = vadd.f32 %v490_v42, %v442_v60  ;;  %v706_v6 = vpop.f32.mrf.mxu3 }
  0xb4   :  { %1077 = vst [vmem:[%s1442_s5] sm:$0xff] %v1076_v63   ;;  %v582_v3 = vadd.f32 %v1395_v45, %v491_v0  ;;  %v497_v5 = vpop.f32.mrf.mxu2 }
  0xb6   :  { %v394_v1 = vpop.f32.mrf.mxu0  ;;  %v736_v8 = vadd.f32 %v699_v43, %v582_v3 }
  0xb7   :  { %v443_v2 = vpop.f32.mrf.mxu1 }
  0xb8   :  { %v444_v4 = vadd.f32 %v443_v2, %v394_v1  ;;  %v752_v13 = vmax.f32 %v736_v8, 0.0 }
  0xba   :  { %v493_v7 = vadd.f32 %v492_v50, %v444_v4  ;;  %v709_v18 = vpop.f32.mrf.mxu3 }
  0xbc   :  { %v583_v9 = vadd.f32 %v1395_v45, %v493_v7  ;;  %v500_v16 = vpop.f32.mrf.mxu2 }
  0xbe   :  { %v737_v10 = vadd.f32 %v701_v51, %v583_v9  ;;  %v397_v11 = vpop.f32.mrf.mxu0 }
  0xbf   :  { %v446_v12 = vpop.f32.mrf.mxu1 }
  0xc0   :  { %v753_v14 = vmax.f32 %v737_v10, 0.0  ;;  %v447_v15 = vadd.f32 %v446_v12, %v397_v11 }
  0xc2   :  { %v1081_v17 = vpack.c.bf16 %v753_v14, %v752_v13  ;;  %v496_v19 = vadd.f32 %v495_v61, %v447_v15  ;;  %v711_v28 = vpop.f32.mrf.mxu3 }
  0xc4   :  { %1113 = vst [vmem:[%s1442_s5 + $0x8] sm:$0xff] %v1081_v17   ;;  %v584_v22 = vadd.f32 %v1395_v45, %v496_v19  ;;  %v502_v24 = vpop.f32.mrf.mxu2 }
  0xc6   :  { %v399_v20 = vpop.f32.mrf.mxu0  ;;  %v738_v26 = vadd.f32 %v704_v62, %v584_v22 }
  0xc7   :  { %v448_v21 = vpop.f32.mrf.mxu1 }
  0xc8   :  { %v449_v23 = vadd.f32 %v448_v21, %v399_v20  ;;  %v754_v32 = vmax.f32 %v738_v26, 0.0 }
  0xca   :  { %v498_v25 = vadd.f32 %v497_v5, %v449_v23  ;;  %v714_v38 = vpop.f32.mrf.mxu3 }
  0xcc   :  { %v585_v27 = vadd.f32 %v1395_v45, %v498_v25  ;;  %v505_v36 = vpop.f32.mrf.mxu2 }
  0xce   :  { %v739_v29 = vadd.f32 %v706_v6, %v585_v27  ;;  %v402_v30 = vpop.f32.mrf.mxu0 }
  0xcf   :  { %v451_v31 = vpop.f32.mrf.mxu1 }
  0xd0   :  { %v755_v33 = vmax.f32 %v739_v29, 0.0  ;;  %v452_v34 = vadd.f32 %v451_v31, %v402_v30 }
  0xd2   :  { %v1086_v35 = vpack.c.bf16 %v755_v33, %v754_v32  ;;  %v501_v37 = vadd.f32 %v500_v16, %v452_v34  ;;  %v716_v54 = vpop.f32.mrf.mxu3 }
  0xd4   :  { %1114 = vst [vmem:[%s1442_s5 + $0x10] sm:$0xff] %v1086_v35   ;;  %v586_v41 = vadd.f32 %v1395_v45, %v501_v37  ;;  %v507_v47 = vpop.f32.mrf.mxu2 }
  0xd6   :  { %v404_v39 = vpop.f32.mrf.mxu0  ;;  %v740_v44 = vadd.f32 %v709_v18, %v586_v41 }
  0xd7   :  { %v453_v40 = vpop.f32.mrf.mxu1 }
  0xd8   :  { %v454_v42 = vadd.f32 %v453_v40, %v404_v39  ;;  %v756_v51 = vmax.f32 %v740_v44, 0.0 }
  0xda   :  { %v503_v43 = vadd.f32 %v502_v24, %v454_v42  ;;  %v719_v63 = vpop.f32.mrf.mxu3 }
  0xdc   :  { %v587_v46 = vadd.f32 %v1395_v45, %v503_v43  ;;  %v510_v57 = vpop.f32.mrf.mxu2 }
  0xde   :  { %v741_v48 = vadd.f32 %v711_v28, %v587_v46  ;;  %v407_v49 = vpop.f32.mrf.mxu0 }
  0xdf   :  { %v456_v50 = vpop.f32.mrf.mxu1 }
  0xe0   :  { %v757_v52 = vmax.f32 %v741_v48, 0.0  ;;  %v457_v53 = vadd.f32 %v456_v50, %v407_v49 }
  0xe2   :  { %v1091_v55 = vpack.c.bf16 %v757_v52, %v756_v51  ;;  %v506_v56 = vadd.f32 %v505_v36, %v457_v53  ;;  %v721_v11 = vpop.f32.mrf.mxu3 }
  0xe4   :  { %1115 = vst [vmem:[%s1442_s5 + $0x18] sm:$0xff] %v1091_v55   ;;  %v588_v60 = vadd.f32 %v1395_v45, %v506_v56  ;;  %v512_v8 = vpop.f32.mrf.mxu2 }
  0xe6   :  { %v409_v58 = vpop.f32.mrf.mxu0  ;;  %v742_v0 = vadd.f32 %v714_v38, %v588_v60 }
  0xe7   :  { %v458_v59 = vpop.f32.mrf.mxu1 }
  0xe8   :  { %v459_v61 = vadd.f32 %v458_v59, %v409_v58  ;;  %v758_v5 = vmax.f32 %v742_v0, 0.0 }
  0xea   :  { %v508_v62 = vadd.f32 %v507_v47, %v459_v61  ;;  %v724_v21 = vpop.f32.mrf.mxu3 }
  0xec   :  { %v589_v1 = vadd.f32 %v1395_v45, %v508_v62  ;;  %v515_v17 = vpop.f32.mrf.mxu2 }
  0xee   :  { %v743_v2 = vadd.f32 %v716_v54, %v589_v1  ;;  %v412_v3 = vpop.f32.mrf.mxu0 }
  0xef   :  { %v461_v4 = vpop.f32.mrf.mxu1 }
  0xf0   :  { %v759_v6 = vmax.f32 %v743_v2, 0.0  ;;  %v462_v7 = vadd.f32 %v461_v4, %v412_v3 }
  0xf2   :  { %v1096_v9 = vpack.c.bf16 %v759_v6, %v758_v5  ;;  %v511_v10 = vadd.f32 %v510_v57, %v462_v7  ;;  %v726_v34 = vpop.f32.mrf.mxu3 }
  0xf4   :  { %1116 = vst [vmem:[%s1442_s5 + $0x20] sm:$0xff] %v1096_v9   ;;  %v590_v14 = vadd.f32 %v1395_v45, %v511_v10  ;;  %v517_v29 = vpop.f32.mrf.mxu2 }
  0xf6   :  { %v414_v12 = vpop.f32.mrf.mxu0  ;;  %v744_v18 = vadd.f32 %v719_v63, %v590_v14 }
  0xf7   :  { %v463_v13 = vpop.f32.mrf.mxu1 }
  0xf8   :  { %v464_v15 = vadd.f32 %v463_v13, %v414_v12  ;;  %v760_v24 = vmax.f32 %v744_v18, 0.0 }
  0xfa   :  { %v513_v16 = vadd.f32 %v512_v8, %v464_v15  ;;  %v729_v47 = vpop.f32.mrf.mxu3 }
  0xfc   :  { %v591_v19 = vadd.f32 %v1395_v45, %v513_v16  ;;  %v520_v39 = vpop.f32.mrf.mxu2 }
  0xfe   :  { %v745_v20 = vadd.f32 %v721_v11, %v591_v19  ;;  %v417_v22 = vpop.f32.mrf.mxu0 }
  0xff   :  { %v466_v23 = vpop.f32.mrf.mxu1 }
 0x100   :  { %v761_v25 = vmax.f32 %v745_v20, 0.0  ;;  %v467_v26 = vadd.f32 %v466_v23, %v417_v22 }
 0x102   :  { %v1101_v27 = vpack.c.bf16 %v761_v25, %v760_v24  ;;  %v516_v28 = vadd.f32 %v515_v17, %v467_v26  ;;  %v731_v57 = vpop.f32.mrf.mxu3 }
 0x104   :  { %1117 = vst [vmem:[%s1442_s5 + $0x28] sm:$0xff] %v1101_v27   ;;  %v592_v32 = vadd.f32 %v1395_v45, %v516_v28  ;;  %v522_v53 = vpop.f32.mrf.mxu2 }
 0x106   :  { %v419_v30 = vpop.f32.mrf.mxu0  ;;  %v746_v36 = vadd.f32 %v724_v21, %v592_v32 }
 0x107   :  { %v468_v31 = vpop.f32.mrf.mxu1 }
 0x108   :  { %v469_v33 = vadd.f32 %v468_v31, %v419_v30  ;;  %v762_v42 = vmax.f32 %v746_v36, 0.0 }
 0x10a   :  { %v518_v35 = vadd.f32 %v517_v29, %v469_v33 }
 0x10c   :  { %v593_v37 = vadd.f32 %v1395_v45, %v518_v35 }
 0x10e   :  { %v747_v38 = vadd.f32 %v726_v34, %v593_v37  ;;  %v422_v40 = vpop.f32.mrf.mxu0 }
 0x10f   :  { %v471_v41 = vpop.f32.mrf.mxu1 }
 0x110   :  { %v763_v43 = vmax.f32 %v747_v38, 0.0  ;;  %v472_v44 = vadd.f32 %v471_v41, %v422_v40 }
 0x112   :  { %v1106_v46 = vpack.c.bf16 %v763_v43, %v762_v42  ;;  %v521_v48 = vadd.f32 %v520_v39, %v472_v44 }
 0x114   :  { %1118 = vst [vmem:[%s1442_s5 + $0x30] sm:$0xff] %v1106_v46   ;;  %v594_v51 = vadd.f32 %v1395_v45, %v521_v48 }
 0x116   :  { %v424_v49 = vpop.f32.mrf.mxu0  ;;  %v748_v55 = vadd.f32 %v729_v47, %v594_v51 }
 0x117   :  { %v473_v50 = vpop.f32.mrf.mxu1 }
 0x118   :  { %v474_v52 = vadd.f32 %v473_v50, %v424_v49  ;;  %v764_v59 = vmax.f32 %v748_v55, 0.0 }
 0x11a   :  { %v523_v54 = vadd.f32 %v522_v53, %v474_v52 }
 0x11c   :  { %v595_v56 = vadd.f32 %v1395_v45, %v523_v54 }
 0x11e   :  { %v749_v58 = vadd.f32 %v731_v57, %v595_v56 }
 0x120   :  { %v765_v60 = vmax.f32 %v749_v58, 0.0 }
 0x122   :  { %v1111_v61 = vpack.c.bf16 %v765_v60, %v764_v59 }
 0x124   :  { %1119 = vst [vmem:[%s1442_s5 + $0x38] sm:$0xff] %v1111_v61  }

// kernel: forward.7
= control target key start
LH: loop header
LB: loop body
LE: loop exit
PB: predicated region body
PF: predicated region fallthrough
CT: control target
= control target key end

     0   :  { %vm350_vm0 = vcmask 261120   ;;  %s1326_s1 = inlined_call_operand.vmem [shape: bf16[288,128], index: 1, kind: input, shape index: {}]   ;;  %s1327_s0 = inlined_call_operand.vmem [shape: bf16[128,288], index: 0, kind: input, shape index: {}]   ;;  %s1328_s2 = inlined_call_operand.vmem [shape: f32[1,128], index: 2, kind: input, shape index: {}]   ;;  %s1329_s3 = inlined_call_operand.vmem [shape: bf16[128,128], index: 3, kind: input, shape index: {}]   ;;  %s1330_s4 = inlined_call_operand.vmem [shape: bf16[128,128], index: 4, kind: output, shape index: {}]  }
   0x1   :  { %v900_v0 = vld [vmem:[%s1326_s1 + $0x38] sm:$0xff]  ;;  %v910_v2 = vld [vmem:[%s1326_s1 + $0x88] sm:$0xff]  ;;  %v899_v3 = vld [vmem:[%s1326_s1 + $0x30] sm:$0xff] }
   0x2   :  { %v908_v1 = vld [vmem:[%s1326_s1 + $0x78] sm:$0xff]  ;;  %375 = vmatpush.bf16.msra.mxu0 %v900_v0  ;;  %997 = vmatpush.bf16.msra.mxu3 %v900_v0  ;;  %v907_v4 = vld [vmem:[%s1326_s1 + $0x70] sm:$0xff]  ;;  %v909_v5 = vld [vmem:[%s1326_s1 + $0x80] sm:$0xff] }
   0x3   :  { %424 = vmatpush.bf16.msra.mxu1 %v908_v1  ;;  %479 = vmatpush.bf16.msra.mxu2 %v910_v2  ;;  %v703_v6 = vld [vmem:[%s1327_s0 + $0x8] sm:$0xf]  ;;  %v871_v7 = vld [vmem:[%s1327_s0 + $0x10] sm:$0xf0]  ;;  %v897_v11 = vld [vmem:[%s1326_s1 + $0x20] sm:$0xff] }
   0x4   :  { %v704_v8 = vor.u32 %v871_v7, %v703_v6  ;;  %v898_v9 = vld [vmem:[%s1326_s1 + $0x28] sm:$0xff]  ;;  %v905_v12 = vld [vmem:[%s1326_s1 + $0x60] sm:$0xff]  ;;  %v896_v13 = vld [vmem:[%s1326_s1 + $0x18] sm:$0xff] }
   0x5   :  { %v906_v10 = vld [vmem:[%s1326_s1 + $0x68] sm:$0xff]  ;;  %v904_v14 = vld [vmem:[%s1326_s1 + $0x58] sm:$0xff]  ;;  %v895_v15 = vld [vmem:[%s1326_s1 + $0x10] sm:$0xff] }
   0x6   :  { %376 = vmatpush.bf16.msra.mxu0 %v899_v3  ;;  %998 = vmatpush.bf16.msra.mxu3 %v899_v3  ;;  %v903_v16 = vld [vmem:[%s1326_s1 + $0x50] sm:$0xff]  ;;  %v715_v17 = vld [vmem:[%s1327_s0 + $0x20] sm:$0xf]  ;;  %v874_v18 = vld [vmem:[%s1327_s0 + $0x28] sm:$0xf0] }
   0x7   :  { %425 = vmatpush.bf16.msra.mxu1 %v907_v4  ;;  %480 = vmatpush.bf16.msra.mxu2 %v909_v5  ;;  %v716_v19 = vor.u32 %v874_v18, %v715_v17  ;;  %v894_v20 = vld [vmem:[%s1326_s1 + $0x8] sm:$0xff]  ;;  %v893_v22 = vld [vmem:[%s1326_s1] sm:$0xff]  ;;  %v767_v26 = vld [vmem:[%s1327_s0 + $0x90] sm:$0xf] }
   0x8   :  { %v902_v21 = vld [vmem:[%s1326_s1 + $0x48] sm:$0xff]  ;;  %v901_v23 = vld [vmem:[%s1326_s1 + $0x40] sm:$0xff]  ;;  %v888_v27 = vld [vmem:[%s1327_s0 + $0x98] sm:$0xf0] }
   0x9   :  { %v695_v24 = vld [vmem:[%s1327_s0] sm:$0xf]  ;;  %v870_v25 = vld [vmem:[%s1327_s0 + $0x8] sm:$0xf0]  ;;  %v869_v28 = vld [vmem:[%s1327_s0 + $0x4] sm:$0xf]  ;;  %v768_v31 = vor.u32 %v888_v27, %v767_v26 }
   0xa   :  { %861 = vmatmul.msk.bf16.vlgmr.msra.gmra.mxu2 %vm350_vm0, %v704_v8  ;;  %377 = vmatpush.bf16.msra.mxu0 %v898_v9  ;;  %v697_v29 = vld [vmem:[%s1327_s0 + $0xc] sm:$0xf0]  ;;  %v696_v30 = vor.u32 %v870_v25, %v695_v24  ;;  %v727_v33 = vld [vmem:[%s1327_s0 + $0x38] sm:$0xf]  ;;  %v877_v34 = vld [vmem:[%s1327_s0 + $0x40] sm:$0xf0] }
   0xb   :  { %999 = vmatpush.bf16.msra.mxu3 %v898_v9  ;;  %426 = vmatpush.bf16.msra.mxu1 %v906_v10  ;;  %v700_v32 = vor.u32 %v869_v28, %v697_v29  ;;  %v728_v35 = vor.u32 %v877_v34, %v727_v33  ;;  %v707_v36 = vld [vmem:[%s1327_s0 + $0x18] sm:$0xf]  ;;  %v873_v37 = vld [vmem:[%s1327_s0 + $0x20] sm:$0xf0]  ;;  %v779_v38 = vld [vmem:[%s1327_s0 + $0xa8] sm:$0xf] }
   0xc   :  { %v891_v39 = vld [vmem:[%s1327_s0 + $0xb0] sm:$0xf0]  ;;  %v872_v40 = vld [vmem:[%s1327_s0 + $0x1c] sm:$0xf]  ;;  %v709_v41 = vld [vmem:[%s1327_s0 + $0x24] sm:$0xf0]  ;;  %v708_v42 = vor.u32 %v873_v37, %v707_v36 }
   0xd   :  { %v780_v43 = vor.u32 %v891_v39, %v779_v38  ;;  %v712_v44 = vor.u32 %v872_v40, %v709_v41  ;;  %v739_v45 = vld [vmem:[%s1327_s0 + $0x50] sm:$0xf]  ;;  %v880_v46 = vld [vmem:[%s1327_s0 + $0x58] sm:$0xf0]  ;;  %v875_v50 = vld [vmem:[%s1327_s0 + $0x34] sm:$0xf] }
   0xe   :  { %378 = vmatpush.bf16.msra.mxu0 %v897_v11  ;;  %v740_v47 = vor.u32 %v880_v46, %v739_v45  ;;  %v719_v48 = vld [vmem:[%s1327_s0 + $0x30] sm:$0xf]  ;;  %v876_v49 = vld [vmem:[%s1327_s0 + $0x38] sm:$0xf0]  ;;  %v721_v51 = vld [vmem:[%s1327_s0 + $0x3c] sm:$0xf0] }
   0xf   :  { %1000 = vmatpush.bf16.msra.mxu3 %v897_v11  ;;  %427 = vmatpush.bf16.msra.mxu1 %v905_v12  ;;  %v887_v52 = vld [vmem:[%s1327_s0 + $0x94] sm:$0xf]  ;;  %v769_v53 = vld [vmem:[%s1327_s0 + $0x9c] sm:$0xf0]  ;;  %v720_v54 = vor.u32 %v876_v49, %v719_v48  ;;  %v724_v55 = vor.u32 %v875_v50, %v721_v51  ;;  %v751_v57 = vld [vmem:[%s1327_s0 + $0x68] sm:$0xf] }
  0x10   :  { %v772_v56 = vor.u32 %v887_v52, %v769_v53  ;;  %v883_v58 = vld [vmem:[%s1327_s0 + $0x70] sm:$0xf0]  ;;  %v731_v60 = vld [vmem:[%s1327_s0 + $0x48] sm:$0xf]  ;;  %v878_v62 = vld [vmem:[%s1327_s0 + $0x4c] sm:$0xf] }
  0x11   :  { %v752_v59 = vor.u32 %v883_v58, %v751_v57  ;;  %v879_v61 = vld [vmem:[%s1327_s0 + $0x50] sm:$0xf0]  ;;  %v733_v63 = vld [vmem:[%s1327_s0 + $0x54] sm:$0xf0]  ;;  %v890_v0 = vld [vmem:[%s1327_s0 + $0xac] sm:$0xf] }
  0x12   :  { %379 = vmatpush.bf16.msra.mxu0 %v896_v13  ;;  %v732_v2 = vor.u32 %v879_v61, %v731_v60  ;;  %v736_v3 = vor.u32 %v878_v62, %v733_v63  ;;  %v763_v5 = vld [vmem:[%s1327_s0 + $0x80] sm:$0xf]  ;;  %v886_v6 = vld [vmem:[%s1327_s0 + $0x88] sm:$0xf0]  ;;  %v745_v11 = vld [vmem:[%s1327_s0 + $0x6c] sm:$0xf0] }
  0x13   :  { %1001 = vmatpush.bf16.msra.mxu3 %v896_v13  ;;  %428 = vmatpush.bf16.msra.mxu1 %v904_v14  ;;  %v764_v7 = vor.u32 %v886_v6, %v763_v5  ;;  %v743_v8 = vld [vmem:[%s1327_s0 + $0x60] sm:$0xf]  ;;  %v882_v9 = vld [vmem:[%s1327_s0 + $0x68] sm:$0xf0]  ;;  %v755_v17 = vld [vmem:[%s1327_s0 + $0x78] sm:$0xf] }
  0x14   :  { %v885_v18 = vld [vmem:[%s1327_s0 + $0x80] sm:$0xf0]  ;;  %v892_v24 = vld [vmem:[%s1327_s0 + $0xb8] sm:$0xf0]  ;;  %v1248_v33 = vld [vmem:[%s1328_s2] ss:$0 sm:$0xff] }
  0x15   :  { %v912_v34 = vld [vmem:[%s1329_s3] sm:$0xff]  }
  0x16   :  { %380 = vmatpush.bf16.msra.mxu0 %v895_v15  ;;  %v913_v39 = vunpack.c.l.bf16 %v912_v34 }
  0x17   :  { %1002 = vmatpush.bf16.msra.mxu3 %v895_v15  ;;  %429 = vmatpush.bf16.msra.mxu1 %v903_v16  ;;  %v889_v15 = vld [vmem:[%s1327_s0 + $0xa0] sm:$0xf0] }
  0x1a   :  { %862 = vmatmul.msk.bf16.gmra.mxu2 %vm350_vm0, %v716_v19  ;;  %381 = vmatpush.bf16.msra.mxu0 %v894_v20  ;;  %v884_v19 = vld [vmem:[%s1327_s0 + $0x7c] sm:$0xf] }
  0x1b   :  { %1003 = vmatpush.bf16.msra.mxu3 %v894_v20  ;;  %430 = vmatpush.bf16.msra.mxu1 %v902_v21  ;;  %v757_v20 = vld [vmem:[%s1327_s0 + $0x84] sm:$0xf0] }
  0x1e   :  { %382 = vmatpush.bf16.msra.mxu0 %v893_v22 }
  0x1f   :  { %1004 = vmatpush.bf16.msra.mxu3 %v893_v22  ;;  %431 = vmatpush.bf16.msra.mxu1 %v901_v23  ;;  %v760_v22 = vor.u32 %v884_v19, %v757_v20 }
  0x21   :  { %383 = vmatmul.bf16.vlgmr.msra.gmra.mxu0 %v696_v30 }
  0x22   :  { %413 = vmatmul.bf16.vlgmr.msra.gmra.mxu3 %v768_v31  ;;  %432 = vmatmul.bf16.vlgmr.msra.gmra.mxu1 %v700_v32 }
  0x23   :  { %1005 = vmatpush.bf16.msrb.mxu3 %v908_v1  ;;  %v781_v1 = vld [vmem:[%s1327_s0 + $0xb4] sm:$0xf0] }
  0x27   :  { %1006 = vmatpush.bf16.msrb.mxu3 %v907_v4  ;;  %v784_v4 = vor.u32 %v890_v0, %v781_v1 }
  0x2a   :  { %863 = vmatmul.msk.bf16.gmra.mxu2 %vm350_vm0, %v728_v35 }
  0x2b   :  { %1007 = vmatpush.bf16.msrb.mxu3 %v906_v10  ;;  %v881_v10 = vld [vmem:[%s1327_s0 + $0x64] sm:$0xf] }
  0x2c   :  { %v748_v13 = vor.u32 %v881_v10, %v745_v11 }
  0x2f   :  { %1008 = vmatpush.bf16.msrb.mxu3 %v905_v12  ;;  %v744_v12 = vor.u32 %v882_v9, %v743_v8 }
  0x31   :  { %388 = vmatmul.bf16.gmra.mxu0 %v708_v42  ;;  %v914_v42 = vunpack.c.h.bf16 %v912_v34  ;;  %v985_v34 = vld [vmem:[%s1329_s3 + $0x18] sm:$0xff]  }
  0x32   :  { %418 = vmatmul.bf16.gmra.mxu3 %v780_v43  ;;  %437 = vmatmul.bf16.gmra.mxu1 %v712_v44 }
  0x33   :  { %1009 = vmatpush.bf16.msrb.mxu3 %v904_v14  ;;  %v775_v14 = vld [vmem:[%s1327_s0 + $0x98] sm:$0xf] }
  0x37   :  { %1010 = vmatpush.bf16.msrb.mxu3 %v903_v16  ;;  %v776_v16 = vor.u32 %v889_v15, %v775_v14 }
  0x3a   :  { %864 = vmatmul.msk.bf16.gmra.mxu2 %vm350_vm0, %v740_v47 }
  0x3b   :  { %1011 = vmatpush.bf16.msrb.mxu3 %v902_v21  ;;  %v756_v21 = vor.u32 %v885_v18, %v755_v17 }
  0x3f   :  { %1012 = vmatpush.bf16.msrb.mxu3 %v901_v23  ;;  %v787_v23 = vld [vmem:[%s1327_s0 + $0xb0] sm:$0xf] }
  0x40   :  { %v788_v25 = vor.u32 %v892_v24, %v787_v23 }
  0x41   :  { %393 = vmatmul.bf16.gmra.mxu0 %v720_v54  ;;  %v983_v54 = vld [vmem:[%s1329_s3 + $0x8] sm:$0xff]  }
  0x42   :  { %442 = vmatmul.bf16.gmra.mxu1 %v724_v55  ;;  %462 = vmatmul.bf16.vlgmr.msrb.gmra.mxu3 %v772_v56  ;;  %v918_v62 = vunpack.c.h.bf16 %v983_v54 }
  0x4a   :  { %865 = vmatmul.msk.bf16.gmra.mxu2 %vm350_vm0, %v752_v59  ;;  %v917_v59 = vunpack.c.l.bf16 %v983_v54 }
  0x51   :  { %398 = vmatmul.bf16.gmra.mxu0 %v732_v2 }
  0x52   :  { %447 = vmatmul.bf16.gmra.mxu1 %v736_v3  ;;  %467 = vmatmul.bf16.gmra.mxu3 %v784_v4 }
  0x5a   :  { %866 = vmatmul.msk.bf16.gmra.mxu2 %vm350_vm0, %v764_v7 }
  0x61   :  { %403 = vmatmul.bf16.gmra.mxu0 %v744_v12  ;;  %v984_v12 = vld [vmem:[%s1329_s3 + $0x10] sm:$0xff]  }
  0x62   :  { %452 = vmatmul.bf16.gmra.mxu1 %v748_v13  ;;  %v921_v17 = vunpack.c.l.bf16 %v984_v12  ;;  %v922_v20 = vunpack.c.h.bf16 %v984_v12 }
  0x6a   :  { %867 = vmatmul.msk.bf16.gmra.mxu2 %vm350_vm0, %v776_v16 }
  0x71   :  { %408 = vmatmul.bf16.gmra.mxu0 %v756_v21 }
  0x72   :  { %457 = vmatmul.bf16.gmra.mxu1 %v760_v22 }
  0x7a   :  { %868 = vmatmul.msk.bf16.gmra.mxu2 %vm350_vm0, %v788_v25 }
  0x8d   :  { %v482_v26 = vpop.f32.mrf.mxu2 }
  0x95   :  { %v484_v27 = vpop.f32.mrf.mxu2 }
  0x9d   :  { %v487_v28 = vpop.f32.mrf.mxu2 }
  0x9e   :  { %v384_v29 = vpop.f32.mrf.mxu0 }
  0x9f   :  { %v433_v30 = vpop.f32.mrf.mxu1 }
  0xa0   :  { %v434_v31 = vadd.f32 %v433_v30, %v384_v29 }
  0xa2   :  { %v483_v32 = vadd.f32 %v482_v26, %v434_v31 }
  0xa4   :  { %v577_v38 = vadd.f32 %v1248_v33, %v483_v32 }
  0xa5   :  { %v489_v35 = vpop.f32.mrf.mxu2  ;;  %v1262_v63 = vpop.f32.mrf.mxu3 }
  0xa6   :  { %v386_v36 = vpop.f32.mrf.mxu0  ;;  %v625_v43 = vadd.f32 %v913_v39, %v577_v38  ;;  %v925_v39 = vunpack.c.l.bf16 %v985_v34 }
  0xa7   :  { %v435_v37 = vpop.f32.mrf.mxu1 }
  0xa8   :  { %v436_v40 = vadd.f32 %v435_v37, %v386_v36  ;;  %v641_v49 = vmax.f32 %v625_v43, 0.0  ;;  %v926_v43 = vunpack.c.h.bf16 %v985_v34 }
  0xaa   :  { %v485_v41 = vadd.f32 %v484_v27, %v436_v40 }
  0xac   :  { %v578_v44 = vadd.f32 %v1248_v33, %v485_v41 }
  0xad   :  { %v492_v45 = vpop.f32.mrf.mxu2  ;;  %v1268_v11 = vpop.f32.mrf.mxu3 }
  0xae   :  { %v626_v46 = vadd.f32 %v914_v42, %v578_v44  ;;  %v389_v47 = vpop.f32.mrf.mxu0 }
  0xaf   :  { %v438_v48 = vpop.f32.mrf.mxu1 }
  0xb0   :  { %v642_v50 = vmax.f32 %v626_v46, 0.0  ;;  %v439_v51 = vadd.f32 %v438_v48, %v389_v47 }
  0xb2   :  { %v946_v52 = vpack.c.bf16 %v642_v50, %v641_v49  ;;  %v488_v53 = vadd.f32 %v487_v28, %v439_v51 }
  0xb4   :  { %947 = vst [vmem:[%s1330_s4] sm:$0xff] %v946_v52   ;;  %v579_v58 = vadd.f32 %v1248_v33, %v488_v53 }
  0xb5   :  { %v494_v55 = vpop.f32.mrf.mxu2  ;;  %v1275_v26 = vpop.f32.mrf.mxu3 }
  0xb6   :  { %v391_v56 = vpop.f32.mrf.mxu0  ;;  %v627_v0 = vadd.f32 %v917_v59, %v579_v58 }
  0xb7   :  { %v440_v57 = vpop.f32.mrf.mxu1 }
  0xb8   :  { %v441_v60 = vadd.f32 %v440_v57, %v391_v56  ;;  %v643_v6 = vmax.f32 %v627_v0, 0.0  ;;  %v986_v56 = vld [vmem:[%s1329_s3 + $0x20] sm:$0xff]  }
  0xba   :  { %v490_v61 = vadd.f32 %v489_v35, %v441_v60 }
  0xbc   :  { %v580_v1 = vadd.f32 %v1248_v33, %v490_v61  ;;  %v929_v61 = vunpack.c.l.bf16 %v986_v56 }
  0xbd   :  { %v497_v2 = vpop.f32.mrf.mxu2  ;;  %v1284_v41 = vpop.f32.mrf.mxu3 }
  0xbe   :  { %v628_v3 = vadd.f32 %v918_v62, %v580_v1  ;;  %v394_v4 = vpop.f32.mrf.mxu0  ;;  %v930_v1 = vunpack.c.h.bf16 %v986_v56 }
  0xbf   :  { %v443_v5 = vpop.f32.mrf.mxu1 }
  0xc0   :  { %v644_v7 = vmax.f32 %v628_v3, 0.0  ;;  %v444_v8 = vadd.f32 %v443_v5, %v394_v4 }
  0xc2   :  { %v951_v9 = vpack.c.bf16 %v644_v7, %v643_v6  ;;  %v493_v10 = vadd.f32 %v492_v45, %v444_v8 }
  0xc4   :  { %990 = vst [vmem:[%s1330_s4 + $0x8] sm:$0xff] %v951_v9   ;;  %v581_v16 = vadd.f32 %v1248_v33, %v493_v10 }
  0xc5   :  { %v499_v13 = vpop.f32.mrf.mxu2  ;;  %v463_v54 = vpop.f32.mrf.mxu3 }
  0xc6   :  { %v396_v14 = vpop.f32.mrf.mxu0  ;;  %v629_v21 = vadd.f32 %v921_v17, %v581_v16  ;;  %v464_v6 = vadd.f32 %v463_v54, %v1262_v63 }
  0xc7   :  { %v445_v15 = vpop.f32.mrf.mxu1 }
  0xc8   :  { %v446_v18 = vadd.f32 %v445_v15, %v396_v14  ;;  %v645_v28 = vmax.f32 %v629_v21, 0.0  ;;  %v988_v15 = vld [vmem:[%s1329_s3 + $0x30] sm:$0xff]  }
  0xca   :  { %v495_v19 = vadd.f32 %v494_v55, %v446_v18  ;;  %v937_v18 = vunpack.c.l.bf16 %v988_v15 }
  0xcc   :  { %v582_v22 = vadd.f32 %v1248_v33, %v495_v19 }
  0xcd   :  { %v502_v23 = vpop.f32.mrf.mxu2  ;;  %v465_v4 = vpop.f32.mrf.mxu3 }
  0xce   :  { %v630_v24 = vadd.f32 %v922_v20, %v582_v22  ;;  %v399_v25 = vpop.f32.mrf.mxu0  ;;  %v466_v17 = vadd.f32 %v465_v4, %v1268_v11  ;;  %v987_v20 = vld [vmem:[%s1329_s3 + $0x28] sm:$0xff]  }
  0xcf   :  { %v448_v27 = vpop.f32.mrf.mxu1 }
  0xd0   :  { %v646_v29 = vmax.f32 %v630_v24, 0.0  ;;  %v449_v30 = vadd.f32 %v448_v27, %v399_v25  ;;  %v933_v27 = vunpack.c.l.bf16 %v987_v20 }
  0xd2   :  { %v956_v31 = vpack.c.bf16 %v646_v29, %v645_v28  ;;  %v498_v32 = vadd.f32 %v497_v2, %v449_v30 }
  0xd4   :  { %991 = vst [vmem:[%s1330_s4 + $0x10] sm:$0xff] %v956_v31   ;;  %v583_v38 = vadd.f32 %v1248_v33, %v498_v32 }
  0xd5   :  { %v504_v35 = vpop.f32.mrf.mxu2  ;;  %v468_v25 = vpop.f32.mrf.mxu3 }
  0xd6   :  { %v401_v36 = vpop.f32.mrf.mxu0  ;;  %v631_v44 = vadd.f32 %v925_v39, %v583_v38 }
  0xd7   :  { %v450_v37 = vpop.f32.mrf.mxu1 }
  0xd8   :  { %v451_v40 = vadd.f32 %v450_v37, %v401_v36  ;;  %v647_v50 = vmax.f32 %v631_v44, 0.0 }
  0xda   :  { %v500_v42 = vadd.f32 %v499_v13, %v451_v40 }
  0xdc   :  { %v584_v45 = vadd.f32 %v1248_v33, %v500_v42  ;;  %v469_v42 = vadd.f32 %v468_v25, %v1275_v26 }
  0xdd   :  { %v507_v46 = vpop.f32.mrf.mxu2 }
  0xde   :  { %v632_v47 = vadd.f32 %v926_v43, %v584_v45  ;;  %v404_v48 = vpop.f32.mrf.mxu0 }
  0xdf   :  { %v453_v49 = vpop.f32.mrf.mxu1 }
  0xe0   :  { %v648_v51 = vmax.f32 %v632_v47, 0.0  ;;  %v454_v52 = vadd.f32 %v453_v49, %v404_v48  ;;  %v470_v48 = vpop.f32.mrf.mxu3  ;;  %v989_v49 = vld [vmem:[%s1329_s3 + $0x38] sm:$0xff]  }
  0xe2   :  { %v961_v53 = vpack.c.bf16 %v648_v51, %v647_v50  ;;  %v503_v55 = vadd.f32 %v502_v23, %v454_v52  ;;  %v938_v23 = vunpack.c.h.bf16 %v988_v15  ;;  %v471_v51 = vadd.f32 %v470_v48, %v1284_v41 }
  0xe3   :  { %v941_v52 = vunpack.c.l.bf16 %v989_v49 }
  0xe4   :  { %992 = vst [vmem:[%s1330_s4 + $0x18] sm:$0xff] %v961_v53   ;;  %v585_v60 = vadd.f32 %v1248_v33, %v503_v55  ;;  %v942_v55 = vunpack.c.h.bf16 %v989_v49 }
  0xe5   :  { %v509_v57 = vpop.f32.mrf.mxu2 }
  0xe6   :  { %v406_v58 = vpop.f32.mrf.mxu0  ;;  %v633_v2 = vadd.f32 %v929_v61, %v585_v60 }
  0xe7   :  { %v455_v59 = vpop.f32.mrf.mxu1 }
  0xe8   :  { %v456_v62 = vadd.f32 %v455_v59, %v406_v58  ;;  %v649_v10 = vmax.f32 %v633_v2, 0.0 }
  0xea   :  { %v505_v0 = vadd.f32 %v504_v35, %v456_v62  ;;  %v934_v35 = vunpack.c.h.bf16 %v987_v20 }
  0xec   :  { %v586_v3 = vadd.f32 %v1248_v33, %v505_v0 }
  0xed   :  { %v512_v5 = vpop.f32.mrf.mxu2 }
  0xee   :  { %v634_v7 = vadd.f32 %v930_v1, %v586_v3  ;;  %v409_v8 = vpop.f32.mrf.mxu0  ;;  %v513_v13 = vadd.f32 %v512_v5, %v464_v6 }
  0xef   :  { %v458_v9 = vpop.f32.mrf.mxu1 }
  0xf0   :  { %v650_v12 = vmax.f32 %v634_v7, 0.0  ;;  %v459_v14 = vadd.f32 %v458_v9, %v409_v8  ;;  %v589_v63 = vadd.f32 %v1248_v33, %v513_v13 }
  0xf2   :  { %v966_v16 = vpack.c.bf16 %v650_v12, %v649_v10  ;;  %v508_v19 = vadd.f32 %v507_v46, %v459_v14  ;;  %v637_v11 = vadd.f32 %v937_v18, %v589_v63 }
  0xf4   :  { %993 = vst [vmem:[%s1330_s4 + $0x20] sm:$0xff] %v966_v16   ;;  %v587_v29 = vadd.f32 %v1248_v33, %v508_v19  ;;  %v653_v36 = vmax.f32 %v637_v11, 0.0 }
  0xf5   :  { %v514_v21 = vpop.f32.mrf.mxu2 }
  0xf6   :  { %v515_v22 = vadd.f32 %v514_v21, %v466_v17  ;;  %v411_v24 = vpop.f32.mrf.mxu0  ;;  %v635_v37 = vadd.f32 %v933_v27, %v587_v29 }
  0xf7   :  { %v460_v28 = vpop.f32.mrf.mxu1 }
  0xf8   :  { %v590_v30 = vadd.f32 %v1248_v33, %v515_v22  ;;  %v461_v31 = vadd.f32 %v460_v28, %v411_v24  ;;  %v651_v45 = vmax.f32 %v635_v37, 0.0 }
  0xfa   :  { %v638_v32 = vadd.f32 %v938_v23, %v590_v30  ;;  %v510_v34 = vadd.f32 %v509_v57, %v461_v31 }
  0xfc   :  { %v654_v38 = vmax.f32 %v638_v32, 0.0  ;;  %v588_v39 = vadd.f32 %v1248_v33, %v510_v34 }
  0xfd   :  { %v517_v40 = vpop.f32.mrf.mxu2 }
  0xfe   :  { %v976_v43 = vpack.c.bf16 %v654_v38, %v653_v36  ;;  %v636_v44 = vadd.f32 %v934_v35, %v588_v39  ;;  %v518_v47 = vadd.f32 %v517_v40, %v469_v42 }
 0x100   :  { %995 = vst [vmem:[%s1330_s4 + $0x30] sm:$0xff] %v976_v43   ;;  %v652_v46 = vmax.f32 %v636_v44, 0.0  ;;  %v591_v26 = vadd.f32 %v1248_v33, %v518_v47 }
 0x102   :  { %v971_v50 = vpack.c.bf16 %v652_v46, %v651_v45  ;;  %v639_v56 = vadd.f32 %v941_v52, %v591_v26 }
 0x104   :  { %994 = vst [vmem:[%s1330_s4 + $0x28] sm:$0xff] %v971_v50   ;;  %v655_v59 = vmax.f32 %v639_v56, 0.0 }
 0x105   :  { %v519_v53 = vpop.f32.mrf.mxu2 }
 0x106   :  { %v520_v54 = vadd.f32 %v519_v53, %v471_v51 }
 0x108   :  { %v592_v57 = vadd.f32 %v1248_v33, %v520_v54 }
 0x10a   :  { %v640_v58 = vadd.f32 %v942_v55, %v592_v57 }
 0x10c   :  { %v656_v60 = vmax.f32 %v640_v58, 0.0 }
 0x10e   :  { %v981_v61 = vpack.c.bf16 %v656_v60, %v655_v59 }
 0x110   :  { %996 = vst [vmem:[%s1330_s4 + $0x38] sm:$0xff] %v981_v61  }

</bundles_post_ra>
